<compile_context>
chip_gen: v7x
topology: tpu7x:2x2x1
jax: 0.10.0
libtpu: 0.0.40
codegen_flags: <defaults>
</compile_context>

<pallas_src>
import math
import functools

import jax
import jax.numpy as jnp
from jax import lax
from jax.experimental import pallas as pl
from jax.experimental.pallas import tpu as pltpu


# --------------------------------------------------------------------------- #
# Parameter preparation (one-time, outside the per-call wrapper).
# --------------------------------------------------------------------------- #
def prepare_mha_params(params, nums_head, *, use_bf16_matmul=True):
    """Fuse/pad/scale the projection weights once.

    params: dict wq,bq,wk,bk,wv,bv,wo,bo with [H,H] weights ([in,out]) / [H] biases.
    Returns a dict consumed by multi_head_attention().
    """
    H = params["wq"].shape[0]
    assert H % nums_head == 0
    head_dim = H // nums_head
    dpad = ((head_dim + 127) // 128) * 128          # lane-aligned per-head width
    scale = 1.0 / math.sqrt(head_dim)
    param_dtype = jnp.bfloat16 if use_bf16_matmul else jnp.float32

    def pad_out_heads(w, b):
        # w: [H, H] (out columns ordered (head, head_dim)), b: [H]
        w = w.reshape(H, nums_head, head_dim)
        b = b.reshape(nums_head, head_dim)
        wp = jnp.zeros((H, nums_head, dpad), w.dtype).at[:, :, :head_dim].set(w)
        bp = jnp.zeros((nums_head, dpad), b.dtype).at[:, :head_dim].set(b)
        return wp.reshape(H, nums_head * dpad), bp.reshape(nums_head * dpad)

    # Fold 1/sqrt(head_dim) into the Q projection (free constant transform).
    wq, bq = pad_out_heads(params["wq"] * scale, params["bq"] * scale)
    wk, bk = pad_out_heads(params["wk"], params["bk"])
    wv, bv = pad_out_heads(params["wv"], params["bv"])
    wqkv = jnp.concatenate([wq, wk, wv], axis=1).astype(param_dtype)   # [H, 3*nh*dpad]
    bqkv = jnp.concatenate([bq, bk, bv]).reshape(1, -1).astype(jnp.float32)

    # Output projection: pad the (head, head_dim) input rows to (head, dpad) with zeros.
    wo = params["wo"].reshape(nums_head, head_dim, H)
    wo_p = jnp.zeros((nums_head, dpad, H), wo.dtype).at[:, :head_dim, :].set(wo)
    wo_p = wo_p.reshape(nums_head * dpad, H).astype(param_dtype)
    bo = params["bo"].reshape(1, H).astype(jnp.float32)

    return {
        "wqkv": wqkv, "bqkv": bqkv, "wo": wo_p, "bo": bo,
        "nums_head": nums_head, "head_dim": head_dim, "dpad": dpad,
        "hidden_dim": H, "use_bf16_matmul": use_bf16_matmul,
    }


# --------------------------------------------------------------------------- #
# Kernel.
# --------------------------------------------------------------------------- #
def _mha_kernel(x_ref, wqkv_ref, bqkv_ref, wo_ref, bo_ref, o_ref,
                qkv_ref, ctx_ref, *,
                batch_block, seq_len, nums_head, dpad, compute_dtype, approx_recip):
    """One grid step = `batch_block` batch elements, flattened to rows.

    x_ref   : [rows, H]            wqkv_ref : [H, 3*nh*dpad]   bqkv_ref : [1, 3*nh*dpad]
    wo_ref  : [nh*dpad, H]         bo_ref   : [1, H]           o_ref    : [rows, H]
    qkv_ref : [rows, 3*nh*dpad]    ctx_ref  : [rows, nh*dpad]  (compute_dtype scratch)
    """
    # ---- Fused QKV projection: one lane-dense MXU matmul, f32 accumulation. ----
    xv = x_ref[...].astype(compute_dtype)
    acc = jnp.dot(xv, wqkv_ref[...], preferred_element_type=jnp.float32)
    qkv_ref[...] = (acc + bqkv_ref[...]).astype(qkv_ref.dtype)

    q_base = 0
    k_base = nums_head * dpad
    v_base = 2 * nums_head * dpad
    dn_qkT = (((1,), (1,)), ((), ()))   # q[s,d] . k[s,d] contracted on d -> [s,s]

    def attend(row0):
        rows = pl.ds(row0, seq_len)
        for h in range(nums_head):       # static lane offsets (multiples of 128) -> dense
            c = h * dpad
            q = qkv_ref[rows, q_base + c:q_base + c + dpad]
            k = qkv_ref[rows, k_base + c:k_base + c + dpad]
            v = qkv_ref[rows, v_base + c:v_base + c + dpad]

            # scores: 1/sqrt(head_dim) already folded into the Q weights/bias.
            s = lax.dot_general(q, k, dn_qkT, preferred_element_type=jnp.float32)

            # Numerically stable softmax, kept in f32 (VPU/EUP).
            m = jnp.max(s, axis=-1, keepdims=True)
            p = jnp.exp(s - m)
            den = jnp.sum(p, axis=-1, keepdims=True)
            if approx_recip:
                attn = p * pl.reciprocal(den, approx=True)
            else:
                attn = p / den

            # Dropout on attention weights is identity in eval mode.
            ctx = jnp.dot(attn.astype(compute_dtype), v,
                          preferred_element_type=jnp.float32)
            ctx_ref[rows, c:c + dpad] = ctx.astype(ctx_ref.dtype)   # dense 128-lane store

    if batch_block == 1:
        attend(0)
    else:
        def body(b, carry):
            r0 = b * seq_len
            if seq_len % 8 == 0:
                r0 = pl.multiple_of(r0, 8)
            attend(r0)
            return carry
        lax.fori_loop(0, batch_block, body, 0)

    # ---- Fused output projection: single K = nh*dpad matmul, lane-dense output. ----
    out = (jnp.dot(ctx_ref[...], wo_ref[...], preferred_element_type=jnp.float32)
           + bo_ref[...])
    o_ref[...] = out.astype(o_ref.dtype)


# --------------------------------------------------------------------------- #
# Wrapper.
# --------------------------------------------------------------------------- #
def _pick_batch_block(B, S, target_rows):
    """Largest batch block whose rows fit the target, preferring >=2 grid steps."""
    candidates = []
    for d in range(1, B + 1):
        if B % d:
            continue
        rows, gb = d * S, B // d
        if gb > 1 and rows % 8 != 0:
            continue                      # (8,128) divisibility for non-full blocks
        prefer_two = (gb >= 2) or (B == 1)   # v7x has 2 TensorCores
        fits = rows <= target_rows
        candidates.append((prefer_two, fits, rows if fits else -rows, d))
    candidates.sort()
    return candidates[-1][3] if candidates else B


def _default_vmem_limit():
    try:
        kind = jax.devices()[0].device_kind.lower()
    except Exception:  # pragma: no cover
        kind = ""
    if "v5" in kind or "v6" in kind or "v4" in kind:
        return 64 * 1024 * 1024            # 128 MiB physical on v5e/v6e
    return 48 * 1024 * 1024                # conservative for v7x (64 MiB physical)


def multi_head_attention(x, prepared, *, batch_block=None, target_rows=512,
                         approx_softmax_recip=True, vmem_limit_bytes=None,
                         single_buffer_weights=True):
    """x: [B, S, H]. prepared: output of prepare_mha_params()."""
    B, S, H = x.shape
    assert H == prepared["hidden_dim"]
    nums_head, dpad = prepared["nums_head"], prepared["dpad"]
    compute_dtype = jnp.bfloat16 if prepared["use_bf16_matmul"] else jnp.float32
    C3 = 3 * nums_head * dpad
    CH = nums_head * dpad

    if batch_block is None:
        batch_block = _pick_batch_block(B, S, target_rows)
    assert B % batch_block == 0
    grid_b = B // batch_block
    rows_per_block = batch_block * S
    if grid_b > 1:
        assert rows_per_block % 8 == 0, "row block must be a multiple of 8 when tiled"

    if vmem_limit_bytes is None:
        vmem_limit_bytes = _default_vmem_limit()

    x2 = x.reshape(B * S, H)   # flatten (B,S) -> rows: sublane-dense, lane-dense blocks

    kernel = functools.partial(
        _mha_kernel, batch_block=batch_block, seq_len=S, nums_head=nums_head,
        dpad=dpad, compute_dtype=compute_dtype, approx_recip=approx_softmax_recip)

    row_spec = pl.BlockSpec((rows_per_block, H), lambda b: (b, 0))

    def build(single_buf):
        def wspec(shape):
            # Grid-invariant weights: single-buffer to halve weight VMEM residency.
            if single_buf:
                return pl.BlockSpec(shape, lambda b: (0,) * len(shape),
                                    pipeline_mode=pl.Buffered(1))
            return pl.BlockSpec(shape, lambda b: (0,) * len(shape))

        return pl.pallas_call(
            kernel,
            out_shape=jax.ShapeDtypeStruct((B * S, H), x.dtype),
            grid_spec=pltpu.PrefetchScalarGridSpec(
                num_scalar_prefetch=0,
                grid=(grid_b,),
                in_specs=[row_spec,
                          wspec((H, C3)), wspec((1, C3)),
                          wspec((CH, H)), wspec((1, H))],
                out_specs=row_spec,
                scratch_shapes=[
                    pltpu.VMEM((rows_per_block, C3), compute_dtype),  # fused qkv
                    pltpu.VMEM((rows_per_block, CH), compute_dtype),  # head contexts
                ],
            ),
            compiler_params=pltpu.CompilerParams(
                dimension_semantics=("parallel",),
                vmem_limit_bytes=vmem_limit_bytes,
            ),
        )

    args = (x2, prepared["wqkv"], prepared["bqkv"], prepared["wo"], prepared["bo"])
    if single_buffer_weights:
        try:
            out2 = build(True)(*args)
        except Exception:
            # Fallback if this JAX build rejects Buffered(1) on pallas_call BlockSpecs.
            out2 = build(False)(*args)
    else:
        out2 = build(False)(*args)

    return out2.reshape(B, S, H)


# --------------------------------------------------------------------------- #
# Pure-JAX reference (mirrors the PyTorch forward, eval mode, no mask).
# --------------------------------------------------------------------------- #
def _reference(x, params, *, nums_head):
    B, S, H = x.shape
    d = H // nums_head
    Q = x @ params["wq"] + params["bq"]
    K = x @ params["wk"] + params["bk"]
    V = x @ params["wv"] + params["bv"]
    q = Q.reshape(B, S, nums_head, d).transpose(0, 2, 1, 3)
    k = K.reshape(B, S, nums_head, d).transpose(0, 2, 1, 3)
    v = V.reshape(B, S, nums_head, d).transpose(0, 2, 1, 3)
    att = jnp.einsum("bhqd,bhkd->bhqk", q, k) / math.sqrt(d)
    w = jax.nn.softmax(att, axis=-1)
    ctx = jnp.einsum("bhqk,bhkd->bhqd", w, v)
    ctx = ctx.transpose(0, 2, 1, 3).reshape(B, S, H)
    return ctx @ params["wo"] + params["bo"]


if __name__ == "__main__":
    B, S, H = 2, 8, 32
    NUM_HEADS = 4

    key = jax.random.PRNGKey(0)
    keys = jax.random.split(key, 9)
    scale = 1.0 / math.sqrt(H)   # roughly matches nn.Linear's uniform fan-in scale
    params = {
        "wq": jax.random.normal(keys[0], (H, H), jnp.float32) * scale,
        "bq": jax.random.normal(keys[1], (H,), jnp.float32) * scale,
        "wk": jax.random.normal(keys[2], (H, H), jnp.float32) * scale,
        "bk": jax.random.normal(keys[3], (H,), jnp.float32) * scale,
        "wv": jax.random.normal(keys[4], (H, H), jnp.float32) * scale,
        "bv": jax.random.normal(keys[5], (H,), jnp.float32) * scale,
        "wo": jax.random.normal(keys[6], (H, H), jnp.float32) * scale,
        "bo": jax.random.normal(keys[7], (H,), jnp.float32) * scale,
    }
    x = jax.random.normal(keys[8], (B, S, H), jnp.float32)

    ref = _reference(x, params, nums_head=NUM_HEADS)

    # f32 path (default semantics; lane-padded head layout, folded scale).
    prep_f32 = prepare_mha_params(params, NUM_HEADS, use_bf16_matmul=False)
    out = multi_head_attention(x, prep_f32)
    out = jax.block_until_ready(out)
    assert out.shape == (B, S, H)
    assert jnp.allclose(out, ref, atol=5e-3, rtol=5e-3), "f32 kernel mismatch vs reference"

    # Same f32 path but forcing batch_block=2 to exercise the in-kernel fori_loop.
    out2 = multi_head_attention(x, prep_f32, batch_block=2)
    out2 = jax.block_until_ready(out2)
    assert jnp.allclose(out2, ref, atol=5e-3, rtol=5e-3), "fori-loop path mismatch"

    # bf16 weights + bf16 MXU operands everywhere (f32 accumulation & f32 softmax).
    prep_bf16 = prepare_mha_params(params, NUM_HEADS, use_bf16_matmul=True)
    out_bf16 = multi_head_attention(x, prep_bf16)
    out_bf16 = jax.block_until_ready(out_bf16)
    assert jnp.allclose(out_bf16, ref, atol=5e-2, rtol=5e-2), "bf16 kernel mismatch"

    print("KERNEL_OK")
</pallas_src>

<mosaic_0001>
module attributes {stable_mosaic.version = 11 : i64} {
  func.func @_mha_kernel(%arg0: i32, %arg1: memref<8x32xf32, #tpu.memory_space<vmem>>, %arg2: memref<32x1536xf32, #tpu.memory_space<vmem>>, %arg3: memref<1x1536xf32, #tpu.memory_space<vmem>>, %arg4: memref<512x32xf32, #tpu.memory_space<vmem>>, %arg5: memref<1x32xf32, #tpu.memory_space<vmem>>, %arg6: memref<8x32xf32, #tpu.memory_space<vmem>>, %arg7: memref<8x1536xf32, #tpu.memory_space<vmem>>, %arg8: memref<8x512xf32, #tpu.memory_space<vmem>>) attributes {dimension_semantics = [#tpu.dimension_semantics<parallel>], iteration_bounds = array<i64: 2>, scalar_prefetch = 0 : i64, scratch_operands = 2 : i64, tpu.core_type = #tpu.core_type<tc>, window_params = [{transform_indices = @transform_0, window_bounds = array<i64: 8, 32>}, {pipeline_mode = #tpu.pipeline_mode<synchronous>, transform_indices = @transform_1, window_bounds = array<i64: 32, 1536>}, {pipeline_mode = #tpu.pipeline_mode<synchronous>, transform_indices = @transform_2, window_bounds = array<i64: 1, 1536>}, {pipeline_mode = #tpu.pipeline_mode<synchronous>, transform_indices = @transform_3, window_bounds = array<i64: 512, 32>}, {pipeline_mode = #tpu.pipeline_mode<synchronous>, transform_indices = @transform_4, window_bounds = array<i64: 1, 32>}, {transform_indices = @transform_5, window_bounds = array<i64: 8, 32>}]} {
    %c0 = arith.constant 0 : index
    %c0_0 = arith.constant 0 : index
    %0 = vector.load %arg1[%c0, %c0_0] : memref<8x32xf32, #tpu.memory_space<vmem>>, vector<8x32xf32>
    %c0_1 = arith.constant 0 : index
    %c0_2 = arith.constant 0 : index
    %1 = vector.load %arg2[%c0_1, %c0_2] : memref<32x1536xf32, #tpu.memory_space<vmem>>, vector<32x1536xf32>
    %cst = arith.constant dense<0.000000e+00> : vector<8x1536xf32>
    %2 = tpu.matmul %0, %1, %cst {dimension_numbers = #tpu.dot_dimension_numbers<[1], [0], [0], [1], [0, 0, 1, 1], [], []>} : vector<8x32xf32>, vector<32x1536xf32>, vector<8x1536xf32> -> vector<8x1536xf32>
    %c0_3 = arith.constant 0 : index
    %c0_4 = arith.constant 0 : index
    %3 = vector.load %arg3[%c0_3, %c0_4] : memref<1x1536xf32, #tpu.memory_space<vmem>>, vector<1x1536xf32>
    %4 = vector.broadcast %3 : vector<1x1536xf32> to vector<8x1536xf32>
    %5 = arith.addf %2, %4 : vector<8x1536xf32>
    %c0_5 = arith.constant 0 : index
    %c0_6 = arith.constant 0 : index
    %6 = vector.load %arg7[%c0_5, %c0_6] : memref<8x1536xf32, #tpu.memory_space<vmem>>, vector<8x1536xf32>
    tpu.vector_store %arg7[%c0_5, %c0_6], %5 {strides = array<i32>} : memref<8x1536xf32, #tpu.memory_space<vmem>>, vector<8x1536xf32>,
    %c0_7 = arith.constant 0 : index
    %c0_8 = arith.constant 0 : index
    %7 = vector.load %arg7[%c0_7, %c0_8] : memref<8x1536xf32, #tpu.memory_space<vmem>>, vector<8x128xf32>
    %c0_9 = arith.constant 0 : index
    %c512 = arith.constant 512 : index
    %8 = vector.load %arg7[%c0_9, %c512] : memref<8x1536xf32, #tpu.memory_space<vmem>>, vector<8x128xf32>
    %c0_10 = arith.constant 0 : index
    %c1024 = arith.constant 1024 : index
    %9 = vector.load %arg7[%c0_10, %c1024] : memref<8x1536xf32, #tpu.memory_space<vmem>>, vector<8x128xf32>
    %cst_11 = arith.constant dense<0.000000e+00> : vector<8x8xf32>
    %10 = tpu.matmul %7, %8, %cst_11 {dimension_numbers = #tpu.dot_dimension_numbers<[1], [1], [0], [0], [0, 0, 1, 0], [], []>} : vector<8x128xf32>, vector<8x128xf32>, vector<8x8xf32> -> vector<8x8xf32>
    %cst_12 = arith.constant dense<0xFF800000> : vector<8xf32>
    %11 = vector.multi_reduction <maximumf>, %10, %cst_12 [1] : vector<8x8xf32> to vector<8xf32>
    %12 = vector.shape_cast %11 : vector<8xf32> to vector<8x1xf32>
    %13 = vector.broadcast %12 : vector<8x1xf32> to vector<8x8xf32>
    %14 = arith.subf %10, %13 : vector<8x8xf32>
    %15 = math.exp %14 : vector<8x8xf32>
    %cst_13 = arith.constant dense<0.000000e+00> : vector<8xf32>
    %16 = vector.multi_reduction <add>, %15, %cst_13 [1] : vector<8x8xf32> to vector<8xf32>
    %17 = vector.shape_cast %16 : vector<8xf32> to vector<8x1xf32>
    %18 = tpu.reciprocal %17 {approx = true} : vector<8x1xf32> -> vector<8x1xf32>
    %19 = vector.broadcast %18 : vector<8x1xf32> to vector<8x8xf32>
    %20 = arith.mulf %15, %19 : vector<8x8xf32>
    %cst_14 = arith.constant dense<0.000000e+00> : vector<8x128xf32>
    %21 = tpu.matmul %20, %9, %cst_14 {dimension_numbers = #tpu.dot_dimension_numbers<[1], [0], [0], [1], [0, 0, 1, 1], [], []>} : vector<8x8xf32>, vector<8x128xf32>, vector<8x128xf32> -> vector<8x128xf32>
    %c0_15 = arith.constant 0 : index
    %c0_16 = arith.constant 0 : index
    %22 = vector.load %arg8[%c0_15, %c0_16] : memref<8x512xf32, #tpu.memory_space<vmem>>, vector<8x128xf32>
    tpu.vector_store %arg8[%c0_15, %c0_16], %21 {strides = array<i32>} : memref<8x512xf32, #tpu.memory_space<vmem>>, vector<8x128xf32>,
    %c0_17 = arith.constant 0 : index
    %c128 = arith.constant 128 : index
    %23 = vector.load %arg7[%c0_17, %c128] : memref<8x1536xf32, #tpu.memory_space<vmem>>, vector<8x128xf32>
    %c0_18 = arith.constant 0 : index
    %c640 = arith.constant 640 : index
    %24 = vector.load %arg7[%c0_18, %c640] : memref<8x1536xf32, #tpu.memory_space<vmem>>, vector<8x128xf32>
    %c0_19 = arith.constant 0 : index
    %c1152 = arith.constant 1152 : index
    %25 = vector.load %arg7[%c0_19, %c1152] : memref<8x1536xf32, #tpu.memory_space<vmem>>, vector<8x128xf32>
    %cst_20 = arith.constant dense<0.000000e+00> : vector<8x8xf32>
    %26 = tpu.matmul %23, %24, %cst_20 {dimension_numbers = #tpu.dot_dimension_numbers<[1], [1], [0], [0], [0, 0, 1, 0], [], []>} : vector<8x128xf32>, vector<8x128xf32>, vector<8x8xf32> -> vector<8x8xf32>
    %cst_21 = arith.constant dense<0xFF800000> : vector<8xf32>
    %27 = vector.multi_reduction <maximumf>, %26, %cst_21 [1] : vector<8x8xf32> to vector<8xf32>
    %28 = vector.shape_cast %27 : vector<8xf32> to vector<8x1xf32>
    %29 = vector.broadcast %28 : vector<8x1xf32> to vector<8x8xf32>
    %30 = arith.subf %26, %29 : vector<8x8xf32>
    %31 = math.exp %30 : vector<8x8xf32>
    %cst_22 = arith.constant dense<0.000000e+00> : vector<8xf32>
    %32 = vector.multi_reduction <add>, %31, %cst_22 [1] : vector<8x8xf32> to vector<8xf32>
    %33 = vector.shape_cast %32 : vector<8xf32> to vector<8x1xf32>
    %34 = tpu.reciprocal %33 {approx = true} : vector<8x1xf32> -> vector<8x1xf32>
    %35 = vector.broadcast %34 : vector<8x1xf32> to vector<8x8xf32>
    %36 = arith.mulf %31, %35 : vector<8x8xf32>
    %cst_23 = arith.constant dense<0.000000e+00> : vector<8x128xf32>
    %37 = tpu.matmul %36, %25, %cst_23 {dimension_numbers = #tpu.dot_dimension_numbers<[1], [0], [0], [1], [0, 0, 1, 1], [], []>} : vector<8x8xf32>, vector<8x128xf32>, vector<8x128xf32> -> vector<8x128xf32>
    %c0_24 = arith.constant 0 : index
    %c128_25 = arith.constant 128 : index
    %38 = vector.load %arg8[%c0_24, %c128_25] : memref<8x512xf32, #tpu.memory_space<vmem>>, vector<8x128xf32>
    tpu.vector_store %arg8[%c0_24, %c128_25], %37 {strides = array<i32>} : memref<8x512xf32, #tpu.memory_space<vmem>>, vector<8x128xf32>,
    %c0_26 = arith.constant 0 : index
    %c256 = arith.constant 256 : index
    %39 = vector.load %arg7[%c0_26, %c256] : memref<8x1536xf32, #tpu.memory_space<vmem>>, vector<8x128xf32>
    %c0_27 = arith.constant 0 : index
    %c768 = arith.constant 768 : index
    %40 = vector.load %arg7[%c0_27, %c768] : memref<8x1536xf32, #tpu.memory_space<vmem>>, vector<8x128xf32>
    %c0_28 = arith.constant 0 : index
    %c1280 = arith.constant 1280 : index
    %41 = vector.load %arg7[%c0_28, %c1280] : memref<8x1536xf32, #tpu.memory_space<vmem>>, vector<8x128xf32>
    %cst_29 = arith.constant dense<0.000000e+00> : vector<8x8xf32>
    %42 = tpu.matmul %39, %40, %cst_29 {dimension_numbers = #tpu.dot_dimension_numbers<[1], [1], [0], [0], [0, 0, 1, 0], [], []>} : vector<8x128xf32>, vector<8x128xf32>, vector<8x8xf32> -> vector<8x8xf32>
    %cst_30 = arith.constant dense<0xFF800000> : vector<8xf32>
    %43 = vector.multi_reduction <maximumf>, %42, %cst_30 [1] : vector<8x8xf32> to vector<8xf32>
    %44 = vector.shape_cast %43 : vector<8xf32> to vector<8x1xf32>
    %45 = vector.broadcast %44 : vector<8x1xf32> to vector<8x8xf32>
    %46 = arith.subf %42, %45 : vector<8x8xf32>
    %47 = math.exp %46 : vector<8x8xf32>
    %cst_31 = arith.constant dense<0.000000e+00> : vector<8xf32>
    %48 = vector.multi_reduction <add>, %47, %cst_31 [1] : vector<8x8xf32> to vector<8xf32>
    %49 = vector.shape_cast %48 : vector<8xf32> to vector<8x1xf32>
    %50 = tpu.reciprocal %49 {approx = true} : vector<8x1xf32> -> vector<8x1xf32>
    %51 = vector.broadcast %50 : vector<8x1xf32> to vector<8x8xf32>
    %52 = arith.mulf %47, %51 : vector<8x8xf32>
    %cst_32 = arith.constant dense<0.000000e+00> : vector<8x128xf32>
    %53 = tpu.matmul %52, %41, %cst_32 {dimension_numbers = #tpu.dot_dimension_numbers<[1], [0], [0], [1], [0, 0, 1, 1], [], []>} : vector<8x8xf32>, vector<8x128xf32>, vector<8x128xf32> -> vector<8x128xf32>
    %c0_33 = arith.constant 0 : index
    %c256_34 = arith.constant 256 : index
    %54 = vector.load %arg8[%c0_33, %c256_34] : memref<8x512xf32, #tpu.memory_space<vmem>>, vector<8x128xf32>
    tpu.vector_store %arg8[%c0_33, %c256_34], %53 {strides = array<i32>} : memref<8x512xf32, #tpu.memory_space<vmem>>, vector<8x128xf32>,
    %c0_35 = arith.constant 0 : index
    %c384 = arith.constant 384 : index
    %55 = vector.load %arg7[%c0_35, %c384] : memref<8x1536xf32, #tpu.memory_space<vmem>>, vector<8x128xf32>
    %c0_36 = arith.constant 0 : index
    %c896 = arith.constant 896 : index
    %56 = vector.load %arg7[%c0_36, %c896] : memref<8x1536xf32, #tpu.memory_space<vmem>>, vector<8x128xf32>
    %c0_37 = arith.constant 0 : index
    %c1408 = arith.constant 1408 : index
    %57 = vector.load %arg7[%c0_37, %c1408] : memref<8x1536xf32, #tpu.memory_space<vmem>>, vector<8x128xf32>
    %cst_38 = arith.constant dense<0.000000e+00> : vector<8x8xf32>
    %58 = tpu.matmul %55, %56, %cst_38 {dimension_numbers = #tpu.dot_dimension_numbers<[1], [1], [0], [0], [0, 0, 1, 0], [], []>} : vector<8x128xf32>, vector<8x128xf32>, vector<8x8xf32> -> vector<8x8xf32>
    %cst_39 = arith.constant dense<0xFF800000> : vector<8xf32>
    %59 = vector.multi_reduction <maximumf>, %58, %cst_39 [1] : vector<8x8xf32> to vector<8xf32>
    %60 = vector.shape_cast %59 : vector<8xf32> to vector<8x1xf32>
    %61 = vector.broadcast %60 : vector<8x1xf32> to vector<8x8xf32>
    %62 = arith.subf %58, %61 : vector<8x8xf32>
    %63 = math.exp %62 : vector<8x8xf32>
    %cst_40 = arith.constant dense<0.000000e+00> : vector<8xf32>
    %64 = vector.multi_reduction <add>, %63, %cst_40 [1] : vector<8x8xf32> to vector<8xf32>
    %65 = vector.shape_cast %64 : vector<8xf32> to vector<8x1xf32>
    %66 = tpu.reciprocal %65 {approx = true} : vector<8x1xf32> -> vector<8x1xf32>
    %67 = vector.broadcast %66 : vector<8x1xf32> to vector<8x8xf32>
    %68 = arith.mulf %63, %67 : vector<8x8xf32>
    %cst_41 = arith.constant dense<0.000000e+00> : vector<8x128xf32>
    %69 = tpu.matmul %68, %57, %cst_41 {dimension_numbers = #tpu.dot_dimension_numbers<[1], [0], [0], [1], [0, 0, 1, 1], [], []>} : vector<8x8xf32>, vector<8x128xf32>, vector<8x128xf32> -> vector<8x128xf32>
    %c0_42 = arith.constant 0 : index
    %c384_43 = arith.constant 384 : index
    %70 = vector.load %arg8[%c0_42, %c384_43] : memref<8x512xf32, #tpu.memory_space<vmem>>, vector<8x128xf32>
    tpu.vector_store %arg8[%c0_42, %c384_43], %69 {strides = array<i32>} : memref<8x512xf32, #tpu.memory_space<vmem>>, vector<8x128xf32>,
    %c0_44 = arith.constant 0 : index
    %c0_45 = arith.constant 0 : index
    %71 = vector.load %arg8[%c0_44, %c0_45] : memref<8x512xf32, #tpu.memory_space<vmem>>, vector<8x512xf32>
    %c0_46 = arith.constant 0 : index
    %c0_47 = arith.constant 0 : index
    %72 = vector.load %arg4[%c0_46, %c0_47] : memref<512x32xf32, #tpu.memory_space<vmem>>, vector<512x32xf32>
    %cst_48 = arith.constant dense<0.000000e+00> : vector<8x32xf32>
    %73 = tpu.matmul %71, %72, %cst_48 {dimension_numbers = #tpu.dot_dimension_numbers<[1], [0], [0], [1], [0, 0, 1, 1], [], []>} : vector<8x512xf32>, vector<512x32xf32>, vector<8x32xf32> -> vector<8x32xf32>
    %c0_49 = arith.constant 0 : index
    %c0_50 = arith.constant 0 : index
    %74 = vector.load %arg5[%c0_49, %c0_50] : memref<1x32xf32, #tpu.memory_space<vmem>>, vector<1x32xf32>
    %75 = vector.broadcast %74 : vector<1x32xf32> to vector<8x32xf32>
    %76 = arith.addf %73, %75 : vector<8x32xf32>
    %c0_51 = arith.constant 0 : index
    %c0_52 = arith.constant 0 : index
    %77 = vector.load %arg6[%c0_51, %c0_52] : memref<8x32xf32, #tpu.memory_space<vmem>>, vector<8x32xf32>
    tpu.vector_store %arg6[%c0_51, %c0_52], %76 {strides = array<i32>} : memref<8x32xf32, #tpu.memory_space<vmem>>, vector<8x32xf32>,
    return
  }
  func.func @transform_0(%arg0: i32) -> (i32, i32) {
    %c0_i32 = arith.constant 0 : i32
    %c0_i32_0 = arith.constant 0 : i32
    return %arg0, %c0_i32 : i32, i32
  }
  func.func @transform_1(%arg0: i32) -> (i32, i32) {
    %c0_i32 = arith.constant 0 : i32
    %c0_i32_0 = arith.constant 0 : i32
    %c0_i32_1 = arith.constant 0 : i32
    return %c0_i32, %c0_i32_0 : i32, i32
  }
  func.func @transform_2(%arg0: i32) -> (i32, i32) {
    %c0_i32 = arith.constant 0 : i32
    %c0_i32_0 = arith.constant 0 : i32
    %c0_i32_1 = arith.constant 0 : i32
    return %c0_i32, %c0_i32_0 : i32, i32
  }
  func.func @transform_3(%arg0: i32) -> (i32, i32) {
    %c0_i32 = arith.constant 0 : i32
    %c0_i32_0 = arith.constant 0 : i32
    %c0_i32_1 = arith.constant 0 : i32
    return %c0_i32, %c0_i32_0 : i32, i32
  }
  func.func @transform_4(%arg0: i32) -> (i32, i32) {
    %c0_i32 = arith.constant 0 : i32
    %c0_i32_0 = arith.constant 0 : i32
    %c0_i32_1 = arith.constant 0 : i32
    return %c0_i32, %c0_i32_0 : i32, i32
  }
  func.func @transform_5(%arg0: i32) -> (i32, i32) {
    %c0_i32 = arith.constant 0 : i32
    %c0_i32_0 = arith.constant 0 : i32
    return %arg0, %c0_i32 : i32, i32
  }
}

module attributes {stable_mosaic.version = 11 : i64} {
  func.func @_mha_kernel(%arg0: i32, %arg1: memref<8x32xf32, #tpu.memory_space<vmem>>, %arg2: memref<32x1536xf32, #tpu.memory_space<vmem>>, %arg3: memref<1x1536xf32, #tpu.memory_space<vmem>>, %arg4: memref<512x32xf32, #tpu.memory_space<vmem>>, %arg5: memref<1x32xf32, #tpu.memory_space<vmem>>, %arg6: memref<8x32xf32, #tpu.memory_space<vmem>>, %arg7: memref<8x1536xf32, #tpu.memory_space<vmem>>, %arg8: memref<8x512xf32, #tpu.memory_space<vmem>>) attributes {dimension_semantics = [#tpu.dimension_semantics<parallel>], iteration_bounds = array<i64: 2>, scalar_prefetch = 0 : i64, scratch_operands = 2 : i64, tpu.core_type = #tpu.core_type<tc>, window_params = [{transform_indices = @transform_0, window_bounds = array<i64: 8, 32>}, {pipeline_mode = #tpu.pipeline_mode<synchronous>, transform_indices = @transform_1, window_bounds = array<i64: 32, 1536>}, {pipeline_mode = #tpu.pipeline_mode<synchronous>, transform_indices = @transform_2, window_bounds = array<i64: 1, 1536>}, {pipeline_mode = #tpu.pipeline_mode<synchronous>, transform_indices = @transform_3, window_bounds = array<i64: 512, 32>}, {pipeline_mode = #tpu.pipeline_mode<synchronous>, transform_indices = @transform_4, window_bounds = array<i64: 1, 32>}, {transform_indices = @transform_5, window_bounds = array<i64: 8, 32>}]} {
    %c0 = arith.constant 0 : index
    %c0_0 = arith.constant 0 : index
    %0 = vector.load %arg1[%c0, %c0_0] : memref<8x32xf32, #tpu.memory_space<vmem>>, vector<8x32xf32>
    %c0_1 = arith.constant 0 : index
    %c0_2 = arith.constant 0 : index
    %1 = vector.load %arg2[%c0_1, %c0_2] : memref<32x1536xf32, #tpu.memory_space<vmem>>, vector<32x1536xf32>
    %cst = arith.constant dense<0.000000e+00> : vector<8x1536xf32>
    %2 = tpu.matmul %0, %1, %cst {dimension_numbers = #tpu.dot_dimension_numbers<[1], [0], [0], [1], [0, 0, 1, 1], [], []>} : vector<8x32xf32>, vector<32x1536xf32>, vector<8x1536xf32> -> vector<8x1536xf32>
    %c0_3 = arith.constant 0 : index
    %c0_4 = arith.constant 0 : index
    %3 = vector.load %arg3[%c0_3, %c0_4] : memref<1x1536xf32, #tpu.memory_space<vmem>>, vector<1x1536xf32>
    %4 = vector.broadcast %3 : vector<1x1536xf32> to vector<8x1536xf32>
    %5 = arith.addf %2, %4 : vector<8x1536xf32>
    %c0_5 = arith.constant 0 : index
    %c0_6 = arith.constant 0 : index
    %6 = vector.load %arg7[%c0_5, %c0_6] : memref<8x1536xf32, #tpu.memory_space<vmem>>, vector<8x1536xf32>
    tpu.vector_store %arg7[%c0_5, %c0_6], %5 {strides = array<i32>} : memref<8x1536xf32, #tpu.memory_space<vmem>>, vector<8x1536xf32>,
    %c0_7 = arith.constant 0 : index
    %c0_8 = arith.constant 0 : index
    %7 = vector.load %arg7[%c0_7, %c0_8] : memref<8x1536xf32, #tpu.memory_space<vmem>>, vector<8x128xf32>
    %c0_9 = arith.constant 0 : index
    %c512 = arith.constant 512 : index
    %8 = vector.load %arg7[%c0_9, %c512] : memref<8x1536xf32, #tpu.memory_space<vmem>>, vector<8x128xf32>
    %c0_10 = arith.constant 0 : index
    %c1024 = arith.constant 1024 : index
    %9 = vector.load %arg7[%c0_10, %c1024] : memref<8x1536xf32, #tpu.memory_space<vmem>>, vector<8x128xf32>
    %cst_11 = arith.constant dense<0.000000e+00> : vector<8x8xf32>
    %10 = tpu.matmul %7, %8, %cst_11 {dimension_numbers = #tpu.dot_dimension_numbers<[1], [1], [0], [0], [0, 0, 1, 0], [], []>} : vector<8x128xf32>, vector<8x128xf32>, vector<8x8xf32> -> vector<8x8xf32>
    %cst_12 = arith.constant dense<0xFF800000> : vector<8xf32>
    %11 = vector.multi_reduction <maximumf>, %10, %cst_12 [1] : vector<8x8xf32> to vector<8xf32>
    %12 = vector.shape_cast %11 : vector<8xf32> to vector<8x1xf32>
    %13 = vector.broadcast %12 : vector<8x1xf32> to vector<8x8xf32>
    %14 = arith.subf %10, %13 : vector<8x8xf32>
    %15 = math.exp %14 : vector<8x8xf32>
    %cst_13 = arith.constant dense<0.000000e+00> : vector<8xf32>
    %16 = vector.multi_reduction <add>, %15, %cst_13 [1] : vector<8x8xf32> to vector<8xf32>
    %17 = vector.shape_cast %16 : vector<8xf32> to vector<8x1xf32>
    %18 = tpu.reciprocal %17 {approx = true} : vector<8x1xf32> -> vector<8x1xf32>
    %19 = vector.broadcast %18 : vector<8x1xf32> to vector<8x8xf32>
    %20 = arith.mulf %15, %19 : vector<8x8xf32>
    %cst_14 = arith.constant dense<0.000000e+00> : vector<8x128xf32>
    %21 = tpu.matmul %20, %9, %cst_14 {dimension_numbers = #tpu.dot_dimension_numbers<[1], [0], [0], [1], [0, 0, 1, 1], [], []>} : vector<8x8xf32>, vector<8x128xf32>, vector<8x128xf32> -> vector<8x128xf32>
    %c0_15 = arith.constant 0 : index
    %c0_16 = arith.constant 0 : index
    %22 = vector.load %arg8[%c0_15, %c0_16] : memref<8x512xf32, #tpu.memory_space<vmem>>, vector<8x128xf32>
    tpu.vector_store %arg8[%c0_15, %c0_16], %21 {strides = array<i32>} : memref<8x512xf32, #tpu.memory_space<vmem>>, vector<8x128xf32>,
    %c0_17 = arith.constant 0 : index
    %c128 = arith.constant 128 : index
    %23 = vector.load %arg7[%c0_17, %c128] : memref<8x1536xf32, #tpu.memory_space<vmem>>, vector<8x128xf32>
    %c0_18 = arith.constant 0 : index
    %c640 = arith.constant 640 : index
    %24 = vector.load %arg7[%c0_18, %c640] : memref<8x1536xf32, #tpu.memory_space<vmem>>, vector<8x128xf32>
    %c0_19 = arith.constant 0 : index
    %c1152 = arith.constant 1152 : index
    %25 = vector.load %arg7[%c0_19, %c1152] : memref<8x1536xf32, #tpu.memory_space<vmem>>, vector<8x128xf32>
    %cst_20 = arith.constant dense<0.000000e+00> : vector<8x8xf32>
    %26 = tpu.matmul %23, %24, %cst_20 {dimension_numbers = #tpu.dot_dimension_numbers<[1], [1], [0], [0], [0, 0, 1, 0], [], []>} : vector<8x128xf32>, vector<8x128xf32>, vector<8x8xf32> -> vector<8x8xf32>
    %cst_21 = arith.constant dense<0xFF800000> : vector<8xf32>
    %27 = vector.multi_reduction <maximumf>, %26, %cst_21 [1] : vector<8x8xf32> to vector<8xf32>
    %28 = vector.shape_cast %27 : vector<8xf32> to vector<8x1xf32>
    %29 = vector.broadcast %28 : vector<8x1xf32> to vector<8x8xf32>
    %30 = arith.subf %26, %29 : vector<8x8xf32>
    %31 = math.exp %30 : vector<8x8xf32>
    %cst_22 = arith.constant dense<0.000000e+00> : vector<8xf32>
    %32 = vector.multi_reduction <add>, %31, %cst_22 [1] : vector<8x8xf32> to vector<8xf32>
    %33 = vector.shape_cast %32 : vector<8xf32> to vector<8x1xf32>
    %34 = tpu.reciprocal %33 {approx = true} : vector<8x1xf32> -> vector<8x1xf32>
    %35 = vector.broadcast %34 : vector<8x1xf32> to vector<8x8xf32>
    %36 = arith.mulf %31, %35 : vector<8x8xf32>
    %cst_23 = arith.constant dense<0.000000e+00> : vector<8x128xf32>
    %37 = tpu.matmul %36, %25, %cst_23 {dimension_numbers = #tpu.dot_dimension_numbers<[1], [0], [0], [1], [0, 0, 1, 1], [], []>} : vector<8x8xf32>, vector<8x128xf32>, vector<8x128xf32> -> vector<8x128xf32>
    %c0_24 = arith.constant 0 : index
    %c128_25 = arith.constant 128 : index
    %38 = vector.load %arg8[%c0_24, %c128_25] : memref<8x512xf32, #tpu.memory_space<vmem>>, vector<8x128xf32>
    tpu.vector_store %arg8[%c0_24, %c128_25], %37 {strides = array<i32>} : memref<8x512xf32, #tpu.memory_space<vmem>>, vector<8x128xf32>,
    %c0_26 = arith.constant 0 : index
    %c256 = arith.constant 256 : index
    %39 = vector.load %arg7[%c0_26, %c256] : memref<8x1536xf32, #tpu.memory_space<vmem>>, vector<8x128xf32>
    %c0_27 = arith.constant 0 : index
    %c768 = arith.constant 768 : index
    %40 = vector.load %arg7[%c0_27, %c768] : memref<8x1536xf32, #tpu.memory_space<vmem>>, vector<8x128xf32>
    %c0_28 = arith.constant 0 : index
    %c1280 = arith.constant 1280 : index
    %41 = vector.load %arg7[%c0_28, %c1280] : memref<8x1536xf32, #tpu.memory_space<vmem>>, vector<8x128xf32>
    %cst_29 = arith.constant dense<0.000000e+00> : vector<8x8xf32>
    %42 = tpu.matmul %39, %40, %cst_29 {dimension_numbers = #tpu.dot_dimension_numbers<[1], [1], [0], [0], [0, 0, 1, 0], [], []>} : vector<8x128xf32>, vector<8x128xf32>, vector<8x8xf32> -> vector<8x8xf32>
    %cst_30 = arith.constant dense<0xFF800000> : vector<8xf32>
    %43 = vector.multi_reduction <maximumf>, %42, %cst_30 [1] : vector<8x8xf32> to vector<8xf32>
    %44 = vector.shape_cast %43 : vector<8xf32> to vector<8x1xf32>
    %45 = vector.broadcast %44 : vector<8x1xf32> to vector<8x8xf32>
    %46 = arith.subf %42, %45 : vector<8x8xf32>
    %47 = math.exp %46 : vector<8x8xf32>
    %cst_31 = arith.constant dense<0.000000e+00> : vector<8xf32>
    %48 = vector.multi_reduction <add>, %47, %cst_31 [1] : vector<8x8xf32> to vector<8xf32>
    %49 = vector.shape_cast %48 : vector<8xf32> to vector<8x1xf32>
    %50 = tpu.reciprocal %49 {approx = true} : vector<8x1xf32> -> vector<8x1xf32>
    %51 = vector.broadcast %50 : vector<8x1xf32> to vector<8x8xf32>
    %52 = arith.mulf %47, %51 : vector<8x8xf32>
    %cst_32 = arith.constant dense<0.000000e+00> : vector<8x128xf32>
    %53 = tpu.matmul %52, %41, %cst_32 {dimension_numbers = #tpu.dot_dimension_numbers<[1], [0], [0], [1], [0, 0, 1, 1], [], []>} : vector<8x8xf32>, vector<8x128xf32>, vector<8x128xf32> -> vector<8x128xf32>
    %c0_33 = arith.constant 0 : index
    %c256_34 = arith.constant 256 : index
    %54 = vector.load %arg8[%c0_33, %c256_34] : memref<8x512xf32, #tpu.memory_space<vmem>>, vector<8x128xf32>
    tpu.vector_store %arg8[%c0_33, %c256_34], %53 {strides = array<i32>} : memref<8x512xf32, #tpu.memory_space<vmem>>, vector<8x128xf32>,
    %c0_35 = arith.constant 0 : index
    %c384 = arith.constant 384 : index
    %55 = vector.load %arg7[%c0_35, %c384] : memref<8x1536xf32, #tpu.memory_space<vmem>>, vector<8x128xf32>
    %c0_36 = arith.constant 0 : index
    %c896 = arith.constant 896 : index
    %56 = vector.load %arg7[%c0_36, %c896] : memref<8x1536xf32, #tpu.memory_space<vmem>>, vector<8x128xf32>
    %c0_37 = arith.constant 0 : index
    %c1408 = arith.constant 1408 : index
    %57 = vector.load %arg7[%c0_37, %c1408] : memref<8x1536xf32, #tpu.memory_space<vmem>>, vector<8x128xf32>
    %cst_38 = arith.constant dense<0.000000e+00> : vector<8x8xf32>
    %58 = tpu.matmul %55, %56, %cst_38 {dimension_numbers = #tpu.dot_dimension_numbers<[1], [1], [0], [0], [0, 0, 1, 0], [], []>} : vector<8x128xf32>, vector<8x128xf32>, vector<8x8xf32> -> vector<8x8xf32>
    %cst_39 = arith.constant dense<0xFF800000> : vector<8xf32>
    %59 = vector.multi_reduction <maximumf>, %58, %cst_39 [1] : vector<8x8xf32> to vector<8xf32>
    %60 = vector.shape_cast %59 : vector<8xf32> to vector<8x1xf32>
    %61 = vector.broadcast %60 : vector<8x1xf32> to vector<8x8xf32>
    %62 = arith.subf %58, %61 : vector<8x8xf32>
    %63 = math.exp %62 : vector<8x8xf32>
    %cst_40 = arith.constant dense<0.000000e+00> : vector<8xf32>
    %64 = vector.multi_reduction <add>, %63, %cst_40 [1] : vector<8x8xf32> to vector<8xf32>
    %65 = vector.shape_cast %64 : vector<8xf32> to vector<8x1xf32>
    %66 = tpu.reciprocal %65 {approx = true} : vector<8x1xf32> -> vector<8x1xf32>
    %67 = vector.broadcast %66 : vector<8x1xf32> to vector<8x8xf32>
    %68 = arith.mulf %63, %67 : vector<8x8xf32>
    %cst_41 = arith.constant dense<0.000000e+00> : vector<8x128xf32>
    %69 = tpu.matmul %68, %57, %cst_41 {dimension_numbers = #tpu.dot_dimension_numbers<[1], [0], [0], [1], [0, 0, 1, 1], [], []>} : vector<8x8xf32>, vector<8x128xf32>, vector<8x128xf32> -> vector<8x128xf32>
    %c0_42 = arith.constant 0 : index
    %c384_43 = arith.constant 384 : index
    %70 = vector.load %arg8[%c0_42, %c384_43] : memref<8x512xf32, #tpu.memory_space<vmem>>, vector<8x128xf32>
    tpu.vector_store %arg8[%c0_42, %c384_43], %69 {strides = array<i32>} : memref<8x512xf32, #tpu.memory_space<vmem>>, vector<8x128xf32>,
    %c0_44 = arith.constant 0 : index
    %c0_45 = arith.constant 0 : index
    %71 = vector.load %arg8[%c0_44, %c0_45] : memref<8x512xf32, #tpu.memory_space<vmem>>, vector<8x512xf32>
    %c0_46 = arith.constant 0 : index
    %c0_47 = arith.constant 0 : index
    %72 = vector.load %arg4[%c0_46, %c0_47] : memref<512x32xf32, #tpu.memory_space<vmem>>, vector<512x32xf32>
    %cst_48 = arith.constant dense<0.000000e+00> : vector<8x32xf32>
    %73 = tpu.matmul %71, %72, %cst_48 {dimension_numbers = #tpu.dot_dimension_numbers<[1], [0], [0], [1], [0, 0, 1, 1], [], []>} : vector<8x512xf32>, vector<512x32xf32>, vector<8x32xf32> -> vector<8x32xf32>
    %c0_49 = arith.constant 0 : index
    %c0_50 = arith.constant 0 : index
    %74 = vector.load %arg5[%c0_49, %c0_50] : memref<1x32xf32, #tpu.memory_space<vmem>>, vector<1x32xf32>
    %75 = vector.broadcast %74 : vector<1x32xf32> to vector<8x32xf32>
    %76 = arith.addf %73, %75 : vector<8x32xf32>
    %c0_51 = arith.constant 0 : index
    %c0_52 = arith.constant 0 : index
    %77 = vector.load %arg6[%c0_51, %c0_52] : memref<8x32xf32, #tpu.memory_space<vmem>>, vector<8x32xf32>
    tpu.vector_store %arg6[%c0_51, %c0_52], %76 {strides = array<i32>} : memref<8x32xf32, #tpu.memory_space<vmem>>, vector<8x32xf32>,
    return
  }
  func.func @transform_0(%arg0: i32) -> (i32, i32) {
    %c0_i32 = arith.constant 0 : i32
    %c0_i32_0 = arith.constant 0 : i32
    return %arg0, %c0_i32 : i32, i32
  }
  func.func @transform_1(%arg0: i32) -> (i32, i32) {
    %c0_i32 = arith.constant 0 : i32
    %c0_i32_0 = arith.constant 0 : i32
    %c0_i32_1 = arith.constant 0 : i32
    return %c0_i32, %c0_i32_0 : i32, i32
  }
  func.func @transform_2(%arg0: i32) -> (i32, i32) {
    %c0_i32 = arith.constant 0 : i32
    %c0_i32_0 = arith.constant 0 : i32
    %c0_i32_1 = arith.constant 0 : i32
    return %c0_i32, %c0_i32_0 : i32, i32
  }
  func.func @transform_3(%arg0: i32) -> (i32, i32) {
    %c0_i32 = arith.constant 0 : i32
    %c0_i32_0 = arith.constant 0 : i32
    %c0_i32_1 = arith.constant 0 : i32
    return %c0_i32, %c0_i32_0 : i32, i32
  }
  func.func @transform_4(%arg0: i32) -> (i32, i32) {
    %c0_i32 = arith.constant 0 : i32
    %c0_i32_0 = arith.constant 0 : i32
    %c0_i32_1 = arith.constant 0 : i32
    return %c0_i32, %c0_i32_0 : i32, i32
  }
  func.func @transform_5(%arg0: i32) -> (i32, i32) {
    %c0_i32 = arith.constant 0 : i32
    %c0_i32_0 = arith.constant 0 : i32
    return %arg0, %c0_i32 : i32, i32
  }
}

</mosaic_0001>

<bundles_post_ra>
// kernel: tpu_custom_call.1
= control target key start
LH: loop header
LB: loop body
LE: loop exit
PB: predicated region body
PF: predicated region fallthrough
CT: control target
= control target key end

     0   :  { %10 = vsyncpa [#allocation5], 0  ;;  %s2665_s0 = inlined_call_operand.vmem [shape: f32[16,32], index: 0, kind: input, shape index: {}]   ;;  %s2666_s1 = inlined_call_operand.vmem [shape: f32[32,1536], index: 1, kind: input, shape index: {}]   ;;  %s2667_s2 = inlined_call_operand.vmem [shape: f32[1,1536], index: 2, kind: input, shape index: {}]   ;;  %s2668_s3 = inlined_call_operand.vmem [shape: f32[512,32], index: 3, kind: input, shape index: {}]   ;;  %s2669_s4 = inlined_call_operand.vmem [shape: f32[1,32], index: 4, kind: input, shape index: {}]   ;;  %s2670_s5 = inlined_call_operand.hbm [shape: f32[16,32], index: 5, kind: output, shape index: {}]  }
   0x1   :  { %12 = vsyncpa [#allocation5 + $0x1], 0  ;;  %s2110_s18 = smov 0   ;;  %s2112_s19 = smov 0  }
   0x2   :  { %s2114_s20 = smov 0   ;;  %s2116_s21 = smov 0  }
   0x3 LB: > { %s2131_s22 = sadd.s32 4294967295, %s2075_s21   ;;  %s1697_s23 = sadd.s32 4294967294, %s2075_s21   ;;  %s2075_s21 = sphi %s2116_s21, %s2676_s21   ;;  %s2071_s20 = sphi %s2114_s20, %s2675_s20   ;;  %s2067_s19 = sphi %s2112_s19, %s2674_s19   ;;  %s2063_s18 = sphi %s2110_s18, %s2673_s18  }
   0x4   : > { %s2135_s24 = sadd.s32 1, %s2075_s21   ;;  %s135_s25 = sadd.s32 1, %s2071_s20 }
   0x5   : > { %s132_s26 = ssub.s32 %s2075_s21, %s2135_s24  ;;  %p145_p0 = scmp.ne.s32.totalorder %s2071_s20, %s2067_s19 }
   0x6   : > { %p133_p1 = scmp.eq.s32.totalorder %s132_s26, 0  ;;  %p146_p2 = scmp.eq.s32.totalorder %s2131_s22, 1 }
   0x7   : > { %p151_p3 = scmp.ne.s32.totalorder %s2067_s19, %s2063_s18  ;;  %p152_p4 = scmp.eq.s32.totalorder %s1697_s23, 1 }
   0x8   : > { %s2146_s27 = scalar_select %p133_p1, %s2071_s20, %s135_s25  }
   0x9   : > { %p2148_p5 = por %p146_p2, %p145_p0  ;;  %p2152_p6 = por %p152_p4, %p151_p3 }
   0xa   : > { %p1700_p7 = scmp.ge.s32.totalorder %s2075_s21, 1  ;;  %p189_p8 = scmp.lt.s32.totalorder %s2075_s21, 3 }
   0xc   : > { %p190_p9 = pnand %p1700_p7, %p189_p8 }
   0xd   : > { %v222_v0 = vld [vmem:[%s2666_s1 + $0x8] sm:$0xff] (!%p190_p9)  ;;  %v221_v2 = vld [vmem:[%s2666_s1] sm:$0xff] (!%p190_p9)  ;;  %p216_p10 = scmp.lt.s32.totalorder (!%p190_p9), %s2131_s22, 1  ;;  %v2077_v7 = vmov (!%p190_p9), 0.0   ;;  %v224_v12 = vld [vmem:[%s2666_s1 + $0x18] sm:$0xff] (!%p190_p9)  ;;  %vm333_vm0 = vcmask (!%p190_p9), 261120  }
   0xe   : > { %193 = sbr.rel (%p190_p9) target bundleno = 1233 (0x4d1), region = 40  ;;  %v234_v1 = vld [vmem:[%s2666_s1 + $0x68] sm:$0xff] (!%p190_p9)  ;;  %v233_v4 = vld [vmem:[%s2666_s1 + $0x60] sm:$0xff] (!%p190_p9)  ;;  %401 = vmatprep.mubr.f32.mxu0 (!%p190_p9), %v2077_v7  ;;  %472 = vmatprep.mubr.f32.mxu1 (!%p190_p9), %v2077_v7  ;;  %v236_v13 = vld [vmem:[%s2666_s1 + $0x78] sm:$0xff] (!%p190_p9)  ;;  %vm2078_vm1 = vmmov (!%p190_p9), 0   ;;  %vm848_vm2 = vcmask (!%p190_p9), 64512  }
   0xf   : > { %v1844_v3 = vpack.c.bf16 (!%p190_p9), %v234_v1, %v222_v0  ;;  %v246_v5 = vld [vmem:[%s2666_s1 + $0xc8] sm:$0xff] (!%p190_p9)  ;;  %v1846_v8 = vpack.c.bf16 (!%p190_p9), %v233_v4, %v221_v2  ;;  %v245_v10 = vld [vmem:[%s2666_s1 + $0xc0] sm:$0xff] (!%p190_p9)  ;;  %v223_v14 = vld [vmem:[%s2666_s1 + $0x10] sm:$0xff] (!%p190_p9)  ;;  %v1852_v17 = vpack.c.bf16 (!%p190_p9), %v236_v13, %v224_v12  ;;  %s213_s15 = sand.u32 (!%p190_p9), 1, %s2067_s19   ;;  %s1715_s23 = sshll.u32 (!%p190_p9), %s2131_s22, 7 }
  0x10   : > { %v258_v6 = vld [vmem:[%s2666_s1 + $0x128] sm:$0xff] (!%p190_p9)  ;;  %v257_v11 = vld [vmem:[%s2666_s1 + $0x120] sm:$0xff] (!%p190_p9)  ;;  %v235_v15 = vld [vmem:[%s2666_s1 + $0x70] sm:$0xff] (!%p190_p9)  ;;  %s1701_s16 = sshll.u32 (!%p190_p9), %s213_s15, 3 }
  0x11   : > { %v1848_v9 = vpack.c.bf16 (!%p190_p9), %v258_v6, %v246_v5  ;;  %1845 = vmatprep.subr.bf16.mxu0 (!%p190_p9), %v1844_v3  ;;  %v1850_v16 = vpack.c.bf16 (!%p190_p9), %v257_v11, %v245_v10  ;;  %v1854_v18 = vpack.c.bf16 (!%p190_p9), %v235_v15, %v223_v14  ;;  %v226_v19 = vld [vmem:[%s2666_s1 + $0x28] sm:$0xff] (!%p190_p9)  ;;  %v225_v21 = vld [vmem:[%s2666_s1 + $0x20] sm:$0xff] (!%p190_p9)  ;;  %v248_v24 = vld [vmem:[%s2666_s1 + $0xd8] sm:$0xff] (!%p190_p9)  ;;  %1853 = vmatprep.subr.bf16.mxu1 (!%p190_p9), %v1852_v17  ;;  %v273_v11 = vlaneseq (!%p190_p9)  ;;  %s215_s25 = scalar_lea.vmem (!%p190_p9), [#allocation4], %s1701_s16 }
  0x12   : > { %1847 = vmatpush1.bf16.msra.mxu0 (!%p190_p9), %v1846_v8  ;;  %v238_v20 = vld [vmem:[%s2666_s1 + $0x88] sm:$0xff] (!%p190_p9)  ;;  %v237_v23 = vld [vmem:[%s2666_s1 + $0x80] sm:$0xff] (!%p190_p9)  ;;  %v260_v25 = vld [vmem:[%s2666_s1 + $0x138] sm:$0xff] (!%p190_p9)  ;;  %s1638_s26 = sshll.u32 (!%p190_p9), %s215_s25, 4  ;;  %s2624_s26 = int_to_ptr.vmem [resolvable:$true] %s1638_s26 }
  0x13   : > { %1849 = vmatprep.subr.bf16.mxu0 (!%p190_p9), %v1848_v9  ;;  %v1860_v22 = vpack.c.bf16 (!%p190_p9), %v238_v20, %v226_v19  ;;  %v1856_v27 = vpack.c.bf16 (!%p190_p9), %v260_v25, %v248_v24  ;;  %v247_v28 = vld [vmem:[%s2666_s1 + $0xd0] sm:$0xff] (!%p190_p9)  ;;  %1855 = vmatpush1.bf16.msra.mxu1 (!%p190_p9), %v1854_v18  ;;  %v250_v31 = vld [vmem:[%s2666_s1 + $0xe8] sm:$0xff] (!%p190_p9)  ;;  %v249_v33 = vld [vmem:[%s2666_s1 + $0xe0] sm:$0xff] (!%p190_p9)  ;;  %v1862_v34 = vpack.c.bf16 (!%p190_p9), %v237_v23, %v225_v21  ;;  %v2333_v12 = vshrl.u32 (!%p190_p9), %v273_v11, 7  ;;  %s2013_s9 = scalar_lea.vmem (!%p190_p9), %s2624_s26, 128 }
  0x14   : > { %v259_v29 = vld [vmem:[%s2666_s1 + $0x130] sm:$0xff] (!%p190_p9)  ;;  %v262_v32 = vld [vmem:[%s2666_s1 + $0x148] sm:$0xff] (!%p190_p9)  ;;  %v261_v35 = vld [vmem:[%s2666_s1 + $0x140] sm:$0xff] (!%p190_p9)  ;;  %p2014_p11 = scmp.ne.s32.totalorder (!%p190_p9), %s2624_s26, %s2013_s9 }
  0x15   : > { %s217_s7 = scalar_select %p216_p10, %s2131_s22, 1  ;;  %v1858_v30 = vpack.c.bf16 %v259_v29, %v247_v28  ;;  %1857 = vmatprep.subr.bf16.mxu1 %v1856_v27  ;;  %v228_v36 = vld [vmem:[%s2666_s1 + $0x38] sm:$0xff]  ;;  %v1864_v38 = vpack.c.bf16 %v262_v32, %v250_v31  ;;  %v227_v40 = vld [vmem:[%s2666_s1 + $0x30] sm:$0xff]  ;;  %v230_v45 = vld [vmem:[%s2666_s1 + $0x48] sm:$0xff]  ;;  %v1866_v47 = vpack.c.bf16 %v261_v35, %v249_v33  ;;  %v291_v15 = vsub.s32 4, %v2333_v12 }
  0x16   : > { %1851 = vmatpush1.bf16.msra.mxu0 %v1850_v16  ;;  %v240_v37 = vld [vmem:[%s2666_s1 + $0x98] sm:$0xff]  ;;  %v239_v41 = vld [vmem:[%s2666_s1 + $0x90] sm:$0xff]  ;;  %v242_v46 = vld [vmem:[%s2666_s1 + $0xa8] sm:$0xff]  ;;  %v275_v18 = vsub.s32 0, %v2333_v12  ;;  %v295_v21 = vsub.s32 5, %v2333_v12  ;;  %v279_v24 = vsub.s32 1, %v2333_v12  ;;  %p2015_p12 = pnand %p2014_p11, %p2148_p5 }
  0x17   : > { %s1702_s14 = sshll.u32 %s217_s7, 3  ;;  %1861 = vmatprep.subr.bf16.mxu0 %v1860_v22  ;;  %v1868_v39 = vpack.c.bf16 %v240_v37, %v228_v36  ;;  %v252_v42 = vld [vmem:[%s2666_s1 + $0xf8] sm:$0xff]  ;;  %1859 = vmatpush1.bf16.msra.mxu1 %v1858_v30  ;;  %v1870_v44 = vpack.c.bf16 %v239_v41, %v227_v40  ;;  %v251_v49 = vld [vmem:[%s2666_s1 + $0xf0] sm:$0xff]  ;;  %v1876_v51 = vpack.c.bf16 %v242_v46, %v230_v45  ;;  %v229_v52 = vld [vmem:[%s2666_s1 + $0x40] sm:$0xff]  ;;  %v299_v22 = vsub.s32 6, %v2333_v12  ;;  %s1625_s7 = scalar_lea.sflag [#allocation5], %s213_s15 }
  0x18   : > { %s219_s8 = scalar_lea.vmem %s2665_s0, %s1702_s14  ;;  %v264_v43 = vld [vmem:[%s2666_s1 + $0x158] sm:$0xff]  ;;  %v263_v50 = vld [vmem:[%s2666_s1 + $0x150] sm:$0xff]  ;;  %v241_v53 = vld [vmem:[%s2666_s1 + $0xa0] sm:$0xff]  ;;  %v283_v33 = vsub.s32 2, %v2333_v12  ;;  %v303_v36 = vsub.s32 7, %v2333_v12  ;;  %v287_v40 = vsub.s32 3, %v2333_v12  ;;  %p2016_p13 = pneg %p2015_p12 }
  0x19   : > { %v2219_v26 = vld [vmem:[%s219_s8] sm:$0xff]  ;;  %v1872_v48 = vpack.c.bf16 %v264_v43, %v252_v42  ;;  %1869 = vmatprep.subr.bf16.mxu1 %v1868_v39  ;;  %v1874_v54 = vpack.c.bf16 %v263_v50, %v251_v49  ;;  %v1878_v55 = vpack.c.bf16 %v241_v53, %v229_v52  ;;  %v254_v56 = vld [vmem:[%s2666_s1 + $0x108] sm:$0xff]  ;;  %v232_v62 = vld [vmem:[%s2666_s1 + $0x58] sm:$0xff]  ;;  %s2622_s8 = scalar_lea.hbm %s2670_s5, %s1715_s23  ;;  %s2079_s22 = smov [#allocation4]  }
  0x1a   : > { %1703 = vmatmul.mubr.msk.f32.vlgmr.msra.gmra.mrb[0].mxu0 %vm333_vm0, %v2219_v26  ;;  %1704 = vmatmul.mubr.msk.f32.vlgmr.msra.gmra.mrb[0].mxu1 %vm333_vm0, %v2219_v26  ;;  %v266_v57 = vld [vmem:[%s2666_s1 + $0x168] sm:$0xff]  ;;  %v253_v59 = vld [vmem:[%s2666_s1 + $0x100] sm:$0xff]  ;;  %v244_v63 = vld [vmem:[%s2666_s1 + $0xb8] sm:$0xff]  ;;  %s2017_s10 = sshll.u32 %s2079_s22, 4  ;;  %s2018_s10 = int_to_ptr.vmem [resolvable:$false] %s2017_s10 }
  0x1b   : > { %1863 = vmatpush1.bf16.msra.mxu0 %v1862_v34  ;;  %543 = vmatprep.mubr.f32.mxu0 %v2077_v7  ;;  %v1880_v58 = vpack.c.bf16 %v266_v57, %v254_v56  ;;  %v265_v60 = vld [vmem:[%s2666_s1 + $0x160] sm:$0xff]  ;;  %v231_v0 = vld [vmem:[%s2666_s1 + $0x50] sm:$0xff]  ;;  %v1884_v1 = vpack.c.bf16 %v244_v63, %v232_v62  ;;  %v256_v3 = vld [vmem:[%s2666_s1 + $0x118] sm:$0xff]  ;;  %s2019_s11 = scalar_lea.vmem %s2018_s10, 256  ;;  %p2020_p0 = scmp.lt.s32.totalorder %s2624_s26, %s2018_s10 }
  0x1c   : > { %1865 = vmatprep.subr.bf16.mxu0 %v1864_v38  ;;  %1871 = vmatpush1.bf16.msra.mxu1 %v1870_v44  ;;  %v1882_v61 = vpack.c.bf16 %v265_v60, %v253_v59  ;;  %v243_v2 = vld [vmem:[%s2666_s1 + $0xb0] sm:$0xff]  ;;  %v268_v4 = vld [vmem:[%s2666_s1 + $0x178] sm:$0xff]  ;;  %v269_v17 = vld [vmem:[%s2667_s2] sm:$0xff]  ;;  %p2021_p1 = scmp.lt.s32.totalorder %s2019_s11, %s2013_s9 }
  0x1d   : > { %614 = vmatprep.mubr.f32.mxu1 %v2077_v7  ;;  %1873 = vmatprep.subr.bf16.mxu1 %v1872_v48  ;;  %v1886_v5 = vpack.c.bf16 %v243_v2, %v231_v0  ;;  %v1888_v6 = vpack.c.bf16 %v268_v4, %v256_v3  ;;  %v255_v8 = vld [vmem:[%s2666_s1 + $0x110] sm:$0xff]  ;;  %v292_v20 = vrot.slane %v269_v17, %v291_v15  ;;  %v2364_v46 = vld [vmem:[%s2667_s2 + $0x8] sm:$0xf] }
  0x1e   : > { %v267_v9 = vld [vmem:[%s2666_s1 + $0x170] sm:$0xff]  ;;  %v276_v23 = vrot.slane %v269_v17, %v275_v18  ;;  %v296_v27 = vrot.slane %v269_v17, %v295_v21  ;;  %v300_v29 = vrot.slane %v269_v17, %v299_v22  ;;  %v280_v32 = vrot.slane %v269_v17, %v279_v24  ;;  %p2022_p2 = por %p2021_p1, %p2020_p0 }
  0x1f   : > { %1867 = vmatpush1.bf16.msra.mxu0 %v1866_v47  ;;  %v1890_v10 = vpack.c.bf16 %v267_v9, %v255_v8  ;;  %v284_v39 = vrot.slane %v269_v17, %v283_v33  ;;  %v304_v41 = vrot.slane %v269_v17, %v303_v36  ;;  %v288_v43 = vrot.slane %v269_v17, %v287_v40  ;;  %v1432_v36 = vld [vmem:[%s2668_s3 + $0xa0] sm:$0xff] }
  0x20   : > { %1877 = vmatprep.subr.bf16.mxu0 %v1876_v51  ;;  %1875 = vmatpush1.bf16.msra.mxu1 %v1874_v54  ;;  %v308_v47 = vrot.slane %v2364_v46, %v275_v18  ;;  %p2023_p3 = pnand %p2022_p2, %p2016_p13 }
  0x21   : > { %1885 = vmatprep.subr.bf16.mxu1 %v1884_v1 }
  0x22   : > { %1705 = vmatmul.mubr.msk.f32.vlgmr.msra.gmra.mrb[2].mxu0 %vm333_vm0, %v2219_v26 }
  0x23   : > { %1879 = vmatpush1.bf16.msra.mxu0 %v1878_v55  ;;  %685 = vmatprep.mubr.f32.mxu0 %v2077_v7 }
  0x24   : > { %1706 = vmatmul.mubr.msk.f32.vlgmr.msra.gmra.mrb[2].mxu1 %vm333_vm0, %v2219_v26  ;;  %1881 = vmatprep.subr.bf16.mxu0 %v1880_v58 }
  0x25   : > { %756 = vmatprep.mubr.f32.mxu1 %v2077_v7  ;;  %1887 = vmatpush1.bf16.msra.mxu1 %v1886_v5 }
  0x26   : > { %1889 = vmatprep.subr.bf16.mxu1 %v1888_v6 }
  0x27   : > { %1883 = vmatpush1.bf16.msra.mxu0 %v1882_v61 }
  0x28   : > { %1804 = vmatprep.subr.mxu0 %v2077_v7 }
  0x29   : > { %1891 = vmatpush1.bf16.msra.mxu1 %v1890_v10 }
  0x2a   : > { %1707 = vmatmul.mubr.msk.f32.vlgmr.msra.gmra.mrb[4].mxu0 %vm333_vm0, %v2219_v26  ;;  %1809 = vmatprep.subr.mxu1 %v2077_v7 }
  0x2b   : > { %1806 = vmatprep.mubr.msk.f32.mxu0 %vm2078_vm1, %v2077_v7 }
  0x2c   : > { %1708 = vmatmul.mubr.msk.f32.vlgmr.msra.gmra.mrb[4].mxu1 %vm333_vm0, %v2219_v26 }
  0x2d   : > { %1811 = vmatprep.mubr.msk.f32.mxu1 %vm2078_vm1, %v2077_v7 }
  0xed   : > { %v403_v13 = vpop.f32.mrb[0].mxu0  ;;  %v474_v16 = vpop.f32.mrb[0].mxu1 }
  0xee   : > { %v405_v14 = vpop.f32.mrb[1].mxu0  ;;  %v476_v19 = vpop.f32.mrb[1].mxu1  ;;  %v404_v31 = vadd.f32 %v403_v13, %v276_v23  ;;  %v475_v42 = vadd.f32 %v474_v16, %v284_v39  ;;  %v1428_v23 = vld [vmem:[%s2668_s3 + $0x80] sm:$0xff] }
  0xef   : > { %v406_v38 = vadd.f32 %v405_v14, %v280_v32  ;;  %v477_v45 = vadd.f32 %v476_v19, %v288_v43  ;;  %v1434_v43 = vld [vmem:[%s2668_s3 + $0xb0] sm:$0xff] }
  0xf5   : > { %v545_v25 = vpop.f32.mrb[2].mxu0 }
  0xf6   : > { %v546_v26 = vadd.f32 %v545_v25, %v292_v20  ;;  %v547_v28 = vpop.f32.mrb[3].mxu0  ;;  %v1429_v25 = vld [vmem:[%s2668_s3 + $0x88] sm:$0xff] }
  0xf7   : > { %v616_v30 = vpop.f32.mrb[2].mxu1  ;;  %v548_v35 = vadd.f32 %v547_v28, %v296_v27  ;;  %v1892_v27 = vpack.c.bf16 %v1429_v25, %v1428_v23  ;;  %v1413_v28 = vld [vmem:[%s2668_s3 + $0x8] sm:$0xff] }
  0xf8   : > { %1805 = vmatpush3.xpose.msra.mxu0 %v546_v26  ;;  %v618_v34 = vpop.f32.mrb[3].mxu1  ;;  %v617_v37 = vadd.f32 %v616_v30, %v300_v29  ;;  %v1412_v26 = vld [vmem:[%s2668_s3] sm:$0xff]  ;;  %v1430_v29 = vld [vmem:[%s2668_s3 + $0x90] sm:$0xff]  ;;  %v1431_v30 = vld [vmem:[%s2668_s3 + $0x98] sm:$0xff] }
  0xf9   : > { %1814 = vmatprep.subr.mxu0 %v2077_v7  ;;  %v619_v44 = vadd.f32 %v618_v34, %v304_v41  ;;  %v1896_v32 = vpack.c.bf16 %v1431_v30, %v1430_v29  ;;  %v1414_v34 = vld [vmem:[%s2668_s3 + $0x10] sm:$0xff]  ;;  %v1416_v41 = vld [vmem:[%s2668_s3 + $0x20] sm:$0xff] }
  0xfb   : > { %1807 = vmatmul.mubr.f32.vlgmr.msra.gmra.mrb[6].mxu0 %v404_v31  ;;  %v1894_v31 = vpack.c.bf16 %v1413_v28, %v1412_v26  ;;  %v1445_v26 = vld [vmem:[%s2668_s3 + $0x108] sm:$0xff] }
  0xfc   : > { %1815 = vmatpush3.xpose.msra.mxu0 %v548_v35  ;;  %1816 = vmatprep.mubr.msk.f32.mxu0 %vm2078_vm1, %v2077_v7  ;;  %v1415_v35 = vld [vmem:[%s2668_s3 + $0x18] sm:$0xff] }
  0xfd   : > { %1824 = vmatprep.subr.mxu0 %v2077_v7  ;;  %v687_v48 = vpop.f32.mrb[4].mxu0 }
  0xfe   : > { %v688_v49 = vadd.f32 %v687_v48, %v308_v47  ;;  %v2367_v50 = vpop.f32.mrb[5].mxu0  ;;  %v1418_v48 = vld [vmem:[%s2668_s3 + $0x30] sm:$0xff] }
  0xff   : > { %1817 = vmatmul.mubr.f32.vlgmr.msra.gmra.mrb[8].mxu0 %v406_v38  ;;  %v2390_v21 = vpop.f32.mrb[4].mxu1  ;;  %v1898_v38 = vpack.c.bf16 %v1415_v35, %v1414_v34  ;;  %v1464_v34 = vld [vmem:[%s2668_s3 + $0x1a0] sm:$0xff] }
 0x100   : > { %1825 = vmatpush3.xpose.msra.mxu0 %v617_v37  ;;  %1826 = vmatprep.mubr.msk.f32.mxu0 %vm2078_vm1, %v2077_v7  ;;  %v2392_v22 = vpop.f32.mrb[5].mxu1  ;;  %v1433_v37 = vld [vmem:[%s2668_s3 + $0xa8] sm:$0xff] }
 0x101   : > { %1834 = vmatprep.subr.mxu0 %v2077_v7  ;;  %1810 = vmatpush3.msra.mxu1 %v688_v49  ;;  %v1900_v39 = vpack.c.bf16 %v1433_v37, %v1432_v36  ;;  %v1419_v49 = vld [vmem:[%s2668_s3 + $0x38] sm:$0xff]  ;;  %v1448_v36 = vld [vmem:[%s2668_s3 + $0x120] sm:$0xff]  ;;  %v1449_v37 = vld [vmem:[%s2668_s3 + $0x128] sm:$0xff] }
 0x102   : > { %1819 = vmatprep.subr.mxu1 %v2077_v7 }
 0x103   : > { %1827 = vmatmul.mubr.f32.vlgmr.msra.gmra.mrb[10].mxu0 %v475_v42  ;;  %v1417_v42 = vld [vmem:[%s2668_s3 + $0x28] sm:$0xff] }
 0x104   : > { %1835 = vmatpush3.xpose.msra.mxu0 %v619_v44  ;;  %1836 = vmatprep.mubr.msk.f32.mxu0 %vm2078_vm1, %v2077_v7  ;;  %v1435_v44 = vld [vmem:[%s2668_s3 + $0xb8] sm:$0xff] }
 0x105   : > { %1893 = vmatprep.subr.bf16.mxu0 %v1892_v27  ;;  %v1904_v47 = vpack.c.bf16 %v1435_v44, %v1434_v43  ;;  %v1463_v27 = vld [vmem:[%s2668_s3 + $0x198] sm:$0xff]  ;;  %v1450_v43 = vld [vmem:[%s2668_s3 + $0x130] sm:$0xff] }
 0x106   : > { %v1451_v44 = vld [vmem:[%s2668_s3 + $0x138] sm:$0xff] }
 0x107   : > { %1837 = vmatmul.mubr.f32.vlgmr.msra.gmra.mrb[12].mxu0 %v477_v45  ;;  %v1902_v45 = vpack.c.bf16 %v1417_v42, %v1416_v41  ;;  %v1934_v41 = vpack.c.bf16 %v1449_v37, %v1448_v36 }
 0x108   : > { %1895 = vmatpush3.bf16.msra.mxu0 %v1894_v31  ;;  %v1446_v31 = vld [vmem:[%s2668_s3 + $0x110] sm:$0xff] }
 0x109   : > { %1897 = vmatprep.subr.bf16.mxu0 %v1896_v32  ;;  %v1447_v32 = vld [vmem:[%s2668_s3 + $0x118] sm:$0xff] }
 0x10c   : > { %1899 = vmatpush3.bf16.msra.mxu0 %v1898_v38  ;;  %v1466_v38 = vld [vmem:[%s2668_s3 + $0x1b0] sm:$0xff] }
 0x10d   : > { %1901 = vmatprep.subr.bf16.mxu0 %v1900_v39  ;;  %v1467_v39 = vld [vmem:[%s2668_s3 + $0x1b8] sm:$0xff] }
 0x10e   : > { %v1936_v42 = vpack.c.bf16 %v1467_v39, %v1466_v38 }
 0x110   : > { %1903 = vmatpush3.bf16.msra.mxu0 %v1902_v45  ;;  %v1468_v45 = vld [vmem:[%s2668_s3 + $0x1c0] sm:$0xff] }
 0x111   : > { %1905 = vmatprep.subr.bf16.mxu0 %v1904_v47  ;;  %v1469_v47 = vld [vmem:[%s2668_s3 + $0x1c8] sm:$0xff] }
 0x1ce   : > { %v844_v51 = vpop.f32.mrb[6].mxu0 }
 0x1cf   : > { %v1808_v52 = vpop.f32.mrb[7].mxu0  ;;  %v849_v53 = vsel %vm848_vm2, %v844_v51, -inf }
 0x1d0   : > { %850 = vmax.xlane.f32.xlu0 %v849_v53  ;;  %v1437_v52 = vld [vmem:[%s2668_s3 + $0xc8] sm:$0xff]  ;;  %v1906_v53 = vpack.c.bf16 %v1419_v49, %v1418_v48  ;;  %v1938_v48 = vpack.c.bf16 %v1451_v44, %v1450_v43  ;;  %v1940_v49 = vpack.c.bf16 %v1469_v47, %v1468_v45 }
 0x1d2   : > { %v1003_v54 = vpop.f32.mrb[8].mxu0  ;;  %1907 = vmatpush3.bf16.msra.mxu0 %v1906_v53 }
 0x1d3   : > { %v1818_v55 = vpop.f32.mrb[9].mxu0  ;;  %v1007_v56 = vsel %vm848_vm2, %v1003_v54, -inf }
 0x1d4   : > { %1008 = vmax.xlane.f32.xlu0 %v1007_v56  ;;  %v1420_v55 = vld [vmem:[%s2668_s3 + $0x40] sm:$0xff]  ;;  %v1421_v56 = vld [vmem:[%s2668_s3 + $0x48] sm:$0xff] }
 0x1d6   : > { %v1161_v57 = vpop.f32.mrb[10].mxu0 }
 0x1d7   : > { %v1828_v58 = vpop.f32.mrb[11].mxu0  ;;  %v1165_v59 = vsel %vm848_vm2, %v1161_v57, -inf }
 0x1d8   : > { %1166 = vmax.xlane.f32.xlu1 %v1165_v59  ;;  %v1439_v58 = vld [vmem:[%s2668_s3 + $0xd8] sm:$0xff]  ;;  %v1910_v59 = vpack.c.bf16 %v1421_v56, %v1420_v55  ;;  %v1470_v56 = vld [vmem:[%s2668_s3 + $0x1d0] sm:$0xff] }
 0x1d9   : > { %v1443_v55 = vld [vmem:[%s2668_s3 + $0xf8] sm:$0xff] }
 0x1da   : > { %v1319_v60 = vpop.f32.mrb[12].mxu0 }
 0x1db   : > { %v1838_v61 = vpop.f32.mrb[13].mxu0  ;;  %v1323_v62 = vsel %vm848_vm2, %v1319_v60, -inf }
 0x1dc   : > { %1324 = vmax.xlane.f32.xlu1 %v1323_v62  ;;  %v1422_v61 = vld [vmem:[%s2668_s3 + $0x50] sm:$0xff]  ;;  %v1423_v62 = vld [vmem:[%s2668_s3 + $0x58] sm:$0xff] }
 0x25d   : > { %v851_v63 = vpop.xlane.xlu0 %850 }
 0x25e   : > { %v852_v0 = vsub.f32 %v844_v51, %v851_v63  ;;  %v1436_v51 = vld [vmem:[%s2668_s3 + $0xc0] sm:$0xff] }
 0x25f   : > { %v1440_v63 = vld [vmem:[%s2668_s3 + $0xe0] sm:$0xff] }
 0x260   : > { %v853_v1 = vmul.f32 1.442695, %v852_v0  ;;  %v1441_v0 = vld [vmem:[%s2668_s3 + $0xe8] sm:$0xff] }
 0x261   : > { %v1009_v2 = vpop.xlane.xlu0 %1008 }
 0x262   : > { %1997 = vpow2.f32 %v853_v1  ;;  %v1010_v3 = vsub.f32 %v1003_v54, %v1009_v2  ;;  %v1908_v54 = vpack.c.bf16 %v1437_v52, %v1436_v51  ;;  %v1914_v1 = vpack.c.bf16 %v1423_v62, %v1422_v61  ;;  %v1452_v51 = vld [vmem:[%s2668_s3 + $0x140] sm:$0xff]  ;;  %v1453_v52 = vld [vmem:[%s2668_s3 + $0x148] sm:$0xff] }
 0x263   : > { %v1916_v2 = vpack.c.bf16 %v1441_v0, %v1440_v63  ;;  %v1942_v53 = vpack.c.bf16 %v1453_v52, %v1452_v51  ;;  %v1454_v63 = vld [vmem:[%s2668_s3 + $0x150] sm:$0xff]  ;;  %v1455_v0 = vld [vmem:[%s2668_s3 + $0x158] sm:$0xff] }
 0x264   : > { %v1011_v4 = vmul.f32 1.442695, %v1010_v3  ;;  %1909 = vmatprep.subr.bf16.mxu0 %v1908_v54  ;;  %v1424_v3 = vld [vmem:[%s2668_s3 + $0x60] sm:$0xff]  ;;  %v1442_v54 = vld [vmem:[%s2668_s3 + $0xf0] sm:$0xff] }
 0x265   : > { %v1167_v5 = vpop.xlane.xlu1 %1166  ;;  %1911 = vmatpush3.bf16.msra.mxu0 %v1910_v59  ;;  %v1426_v59 = vld [vmem:[%s2668_s3 + $0x70] sm:$0xff] }
 0x266   : > { %1999 = vpow2.f32 %v1011_v4  ;;  %v1168_v6 = vsub.f32 %v1161_v57, %v1167_v5  ;;  %v1438_v57 = vld [vmem:[%s2668_s3 + $0xd0] sm:$0xff]  ;;  %v1425_v4 = vld [vmem:[%s2668_s3 + $0x68] sm:$0xff] }
 0x267   : > { %v1918_v5 = vpack.c.bf16 %v1425_v4, %v1424_v3  ;;  %v1473_v3 = vld [vmem:[%s2668_s3 + $0x1e8] sm:$0xff] }
 0x268   : > { %v1169_v8 = vmul.f32 1.442695, %v1168_v6 }
 0x269   : > { %v1325_v9 = vpop.xlane.xlu1 %1324 }
 0x26a   : > { %2001 = vpow2.f32 %v1169_v8  ;;  %v1326_v10 = vsub.f32 %v1319_v60, %v1325_v9  ;;  %v1912_v60 = vpack.c.bf16 %v1439_v58, %v1438_v57  ;;  %v1920_v57 = vpack.c.bf16 %v1443_v55, %v1442_v54  ;;  %v1471_v58 = vld [vmem:[%s2668_s3 + $0x1d8] sm:$0xff] }
 0x26b   : > { %v1944_v61 = vpack.c.bf16 %v1471_v58, %v1470_v56 }
 0x26c   : > { %v2374_v11 = vpop.eup %1997  ;;  %v1327_v13 = vmul.f32 1.442695, %v1326_v10  ;;  %1913 = vmatprep.subr.bf16.mxu0 %v1912_v60  ;;  %v312_v10 = vrot.slane %v2364_v46, %v279_v24  ;;  %v320_v24 = vrot.slane %v2364_v46, %v287_v40  ;;  %v1427_v60 = vld [vmem:[%s2668_s3 + $0x78] sm:$0xff] }
 0x26d   : > { %v855_v14 = vsel %vm848_vm2, %v2374_v11, 0.0  ;;  %1915 = vmatpush3.bf16.msra.mxu0 %v1914_v1  ;;  %v1922_v62 = vpack.c.bf16 %v1427_v60, %v1426_v59  ;;  %v1946_v1 = vpack.c.bf16 %v1455_v0, %v1454_v63 }
 0x26e   : > { %2003 = vpow2.f32 %v1327_v13  ;;  %856 = vadd.xlane.f32.xlu0 %v855_v14  ;;  %1917 = vmatprep.subr.bf16.mxu0 %v1916_v2  ;;  %v316_v14 = vrot.slane %v2364_v46, %v283_v33  ;;  %v761_v40 = vadd.f32 %v2392_v22, %v320_v24  ;;  %v1462_v22 = vld [vmem:[%s2668_s3 + $0x190] sm:$0xff]  ;;  %v1472_v2 = vld [vmem:[%s2668_s3 + $0x1e0] sm:$0xff] }
 0x26f   : > { %v1928_v30 = vpack.c.bf16 %v1463_v27, %v1462_v22  ;;  %v1948_v4 = vpack.c.bf16 %v1473_v3, %v1472_v2 }
 0x270   : > { %v2378_v15 = vpop.eup %1999  ;;  %v759_v25 = vadd.f32 %v2390_v21, %v316_v14  ;;  %v1444_v21 = vld [vmem:[%s2668_s3 + $0x100] sm:$0xff]  ;;  %v1458_v14 = vld [vmem:[%s2668_s3 + $0x170] sm:$0xff] }
 0x271   : > { %v1013_v16 = vsel %vm848_vm2, %v2378_v15, 0.0  ;;  %1919 = vmatpush3.bf16.msra.mxu0 %v1918_v5  ;;  %v1926_v28 = vpack.c.bf16 %v1445_v26, %v1444_v21  ;;  %v1456_v5 = vld [vmem:[%s2668_s3 + $0x160] sm:$0xff] }
 0x272   : > { %1014 = vadd.xlane.f32.xlu1 %v1013_v16  ;;  %1921 = vmatprep.subr.bf16.mxu0 %v1920_v57  ;;  %v1713_v21 = vld [vmem:[%s2669_s4] ss:$0 sm:$0xff] }
 0x274   : > { %v2382_v17 = vpop.eup %2001 }
 0x275   : > { %v1171_v18 = vsel %vm848_vm2, %v2382_v17, 0.0  ;;  %1923 = vmatpush3.bf16.msra.mxu0 %v1922_v62 }
 0x276   : > { %1172 = vadd.xlane.f32.xlu0 %v1171_v18 }
 0x278   : > { %v2386_v19 = vpop.eup %2003 }
 0x279   : > { %v1329_v20 = vsel %vm848_vm2, %v2386_v19, 0.0 }
 0x27a   : > { %1330 = vadd.xlane.f32.xlu1 %v1329_v20  ;;  %v690_v20 = vadd.f32 %v2367_v50, %v312_v10  ;;  %v1460_v50 = vld [vmem:[%s2668_s3 + $0x180] sm:$0xff]  ;;  %v1475_v10 = vld [vmem:[%s2668_s3 + $0x1f8] sm:$0xff] }
 0x2fb   : > { %v857_v6 = vpop.xlane.xlu0 %856 }
 0x2fc   : > { %2005 = vrcp.f32 %v857_v6  ;;  %v1457_v6 = vld [vmem:[%s2668_s3 + $0x168] sm:$0xff] }
 0x2ff   : > { %v1015_v8 = vpop.xlane.xlu1 %1014 }
 0x300   : > { %2007 = vrcp.f32 %v1015_v8  ;;  %v1950_v8 = vpack.c.bf16 %v1457_v6, %v1456_v5 }
 0x303   : > { %v1173_v9 = vpop.xlane.xlu0 %1172 }
 0x304   : > { %2009 = vrcp.f32 %v1173_v9  ;;  %v1474_v9 = vld [vmem:[%s2668_s3 + $0x1f0] sm:$0xff] }
 0x306   : > { %v2006_v13 = vpop.eup %2005 }
 0x307   : > { %v859_v16 = vmul.f32 %v2006_v13, %v2374_v11  ;;  %v1331_v18 = vpop.xlane.xlu1 %1330  ;;  %v1461_v11 = vld [vmem:[%s2668_s3 + $0x188] sm:$0xff]  ;;  %v1952_v13 = vpack.c.bf16 %v1475_v10, %v1474_v9 }
 0x308   : > { %2011 = vrcp.f32 %v1331_v18 }
 0x309   : > { %1812 = vmatmul.mubr.msk.f32.vlgmr.msra.gmra.mrb[6].mxu1 %vm848_vm2, %v859_v16  ;;  %v1459_v16 = vld [vmem:[%s2668_s3 + $0x178] sm:$0xff] }
 0x30a   : > { %v2008_v23 = vpop.eup %2007  ;;  %1820 = vmatpush3.msra.mxu1 %v690_v20  ;;  %1821 = vmatprep.mubr.msk.f32.mxu1 %vm2078_vm1, %v2077_v7  ;;  %v1954_v18 = vpack.c.bf16 %v1459_v16, %v1458_v14 }
 0x30b   : > { %v1017_v33 = vmul.f32 %v2008_v23, %v2378_v15  ;;  %1829 = vmatprep.subr.mxu1 %v2077_v7  ;;  %v1924_v15 = vpack.c.bf16 %v1461_v11, %v1460_v50 }
 0x30d   : > { %1822 = vmatmul.mubr.msk.f32.vlgmr.msra.gmra.mrb[8].mxu1 %vm848_vm2, %v1017_v33 }
 0x30e   : > { %v2010_v12 = vpop.eup %2009  ;;  %1830 = vmatpush3.msra.mxu1 %v759_v25  ;;  %1831 = vmatprep.mubr.msk.f32.mxu1 %vm2078_vm1, %v2077_v7 }
 0x30f   : > { %v1175_v46 = vmul.f32 %v2010_v12, %v2382_v17  ;;  %1839 = vmatprep.subr.mxu1 %v2077_v7 }
 0x311   : > { %1832 = vmatmul.mubr.msk.f32.vlgmr.msra.gmra.mrb[10].mxu1 %vm848_vm2, %v1175_v46 }
 0x312   : > { %v2012_v17 = vpop.eup %2011  ;;  %1840 = vmatpush3.msra.mxu1 %v761_v40  ;;  %1841 = vmatprep.mubr.msk.f32.mxu1 %vm2078_vm1, %v2077_v7  ;;  %v1465_v7 = vld [vmem:[%s2668_s3 + $0x1a8] sm:$0xff] }
 0x313   : > { %v1333_v29 = vmul.f32 %v2012_v17, %v2386_v19  ;;  %1925 = vmatprep.subr.bf16.mxu1 %v1924_v15  ;;  %v1930_v19 = vpack.c.bf16 %v1447_v32, %v1446_v31  ;;  %v1932_v35 = vpack.c.bf16 %v1465_v7, %v1464_v34 }
 0x315   : > { %1842 = vmatmul.mubr.msk.f32.vlgmr.msra.gmra.mrb[12].mxu1 %vm848_vm2, %v1333_v29 }
 0x316   : > { %1927 = vmatpush3.bf16.msra.mxu1 %v1926_v28 }
 0x317   : > { %1929 = vmatprep.subr.bf16.mxu1 %v1928_v30 }
 0x31a   : > { %1931 = vmatpush3.bf16.msra.mxu1 %v1930_v19 }
 0x31b   : > { %1933 = vmatprep.subr.bf16.mxu1 %v1932_v35 }
 0x31e   : > { %1935 = vmatpush3.bf16.msra.mxu1 %v1934_v41 }
 0x31f   : > { %1937 = vmatprep.subr.bf16.mxu1 %v1936_v42 }
 0x322   : > { %1939 = vmatpush3.bf16.msra.mxu1 %v1938_v48 }
 0x323   : > { %1941 = vmatprep.subr.bf16.mxu1 %v1940_v49 }
 0x326   : > { %1943 = vmatpush3.bf16.msra.mxu1 %v1942_v53 }
 0x327   : > { %1945 = vmatprep.subr.bf16.mxu1 %v1944_v61 }
 0x32a   : > { %1947 = vmatpush3.bf16.msra.mxu1 %v1946_v1 }
 0x32b   : > { %1949 = vmatprep.subr.bf16.mxu1 %v1948_v4 }
 0x32e   : > { %1951 = vmatpush3.bf16.msra.mxu1 %v1950_v8 }
 0x32f   : > { %1953 = vmatprep.subr.bf16.mxu1 %v1952_v13 }
 0x332   : > { %1955 = vmatpush3.bf16.msra.mxu1 %v1954_v18 }
 0x3dc   : > { %v929_v20 = vpop.f32.mrb[6].mxu1 }
 0x3dd   : > { %v1813_v23 = vpop.f32.mrb[7].mxu1 }
 0x3e0   : > { %v1087_v25 = vpop.f32.mrb[8].mxu1 }
 0x3e1   : > { %v1823_v24 = vpop.f32.mrb[9].mxu1  ;;  %1547 = vmatprep.mubr.f32.mxu0 %v1087_v25 }
 0x3e2   : > { %1548 = vmatmul.mubr.f32.vlgmr.msra.gmra.mrb[14].mxu0 %v929_v20 }
 0x3e4   : > { %v1245_v33 = vpop.f32.mrb[10].mxu1 }
 0x3e5   : > { %v1833_v50 = vpop.f32.mrb[11].mxu1 }
 0x3e8   : > { %v1403_v11 = vpop.f32.mrb[12].mxu1 }
 0x3e9   : > { %v1843_v12 = vpop.f32.mrb[13].mxu1  ;;  %1617 = vmatprep.mubr.f32.mxu1 %v1403_v11 }
 0x3ea   : > { %1618 = vmatmul.mubr.f32.vlgmr.msra.gmra.mrb[14].mxu1 %v1245_v33 }
 0x4b5   : > { %v1766_v40 = vpop.f32.mrb[14].mxu0 }
 0x4b6   : > { %v1767_v46 = vpop.f32.mrb[15].mxu0 }
 0x4b7   : > { %v1768_v15 = vadd.f32 %v1767_v46, %v1766_v40 }
 0x4b9   : > { %v1550_v27 = vadd.f32 %v1768_v15, %v1713_v21 }
 0x4bd   : > { %v1801_v26 = vpop.f32.mrb[14].mxu1 }
 0x4be   : > { %v1802_v22 = vpop.f32.mrb[15].mxu1 }
 0x4bf   : > { %v1803_v17 = vadd.f32 %v1802_v22, %v1801_v26 }
 0x4c1   : > { %v1620_v28 = vadd.f32 %v1803_v17, %v1550_v27 }
 0x4c3   : > { %1623 = vst.msk [vmem:[%s215_s25] sm:$0xff] %vm333_vm0, %v1620_v28 }
 0x4c4   : > { %2026 = shalt.err (!%p2023_p3)
}
 0x4c5   : > { %s2027_s12 = scalar_lea.hbm %s2622_s8, 128  ;;  %s2031_s16 = scalar_lea.hbm %s2670_s5, 256 }
 0x4c6   : > { %p2028_p4 = scmp.ne.s32.totalorder %s2622_s8, %s2027_s12  ;;  %p2032_p9 = scmp.lt.u32.totalorder %s2622_s8, %s2670_s5 }
 0x4c7   : > { %p2033_p10 = scmp.lt.u32.totalorder %s2031_s16, %s2027_s12  ;;  %p2035_p12 = scmp.lt.u32.totalorder %s2027_s12, %s2622_s8 }
 0x4c8   : > { %p2029_p7 = pnand %p2028_p4, %p2148_p5 }
 0x4c9   : > { %p2034_p11 = por %p2033_p10, %p2032_p9 }
 0x4ca   : > { %p2030_p8 = pneg %p2029_p7 }
 0x4cb   : > { %p2036_p13 = por %p2035_p12, %p2034_p11 }
 0x4cd   : > { %p2037_p0 = pnand %p2036_p13, %p2030_p8 }
 0x4cf   : > { %2040 = shalt.err (!%p2037_p0)
}
 0x4d0   : > { %1956 = dma.vmem_to_hbm [thread:$0]  (%p2148_p5), %s2624_s26, 128, %s2622_s8, %s1625_s7  }
 0x4d1 PF: > { %p1962_p1 = scmp.ge.s32.totalorder %s2075_s21, 2  ;;  %s1650_s23 = sand.u32 1, %s2063_s18  }
 0x4d2   : > { %s1651_s25 = scalar_lea.sflag [#allocation5], %s1650_s23 }
 0x4d3   : > { %p1959_p2 = pnand %p1962_p1, %p2152_p6 }
 0x4d5   : > { %2058 = dma.done.wait (!%p1959_p2), %s1651_s25, 128  }
 0x4d6   : > { %2060 = vsyncadd (!%p1959_p2), %s1651_s25, 4294967168  ;;  %p15_p3 = scmp.ge.s32.totalorder %s2135_s24, 4   ;;  %s2673_s18 = smov %s2067_s19 }
 0x4d7   : > { %s2674_s19 = smov %s2071_s20  ;;  %s2675_s20 = smov %s2146_s27 }
 0x4d8   : > { %s2676_s21 = smov %s2135_s24  ;;  %17 = sbr.rel (!%p15_p3) target bundleno = 3 (0x3), region = 75 }
 0x4df   :  { %1656 = vsyncpa [#allocation5], 1 }
 0x4e0   :  { %1658 = vsyncpa [#allocation5 + $0x1], 1 }

// kernel: tpu_custom_call.1
= control target key start
LH: loop header
LB: loop body
LE: loop exit
PB: predicated region body
PF: predicated region fallthrough
CT: control target
= control target key end

     0   :  { %10 = vsyncpa [#allocation5], 0  ;;  %s2665_s0 = inlined_call_operand.vmem [shape: f32[16,32], index: 0, kind: input, shape index: {}]   ;;  %s2666_s1 = inlined_call_operand.vmem [shape: f32[32,1536], index: 1, kind: input, shape index: {}]   ;;  %s2667_s2 = inlined_call_operand.vmem [shape: f32[1,1536], index: 2, kind: input, shape index: {}]   ;;  %s2668_s3 = inlined_call_operand.vmem [shape: f32[512,32], index: 3, kind: input, shape index: {}]   ;;  %s2669_s4 = inlined_call_operand.vmem [shape: f32[1,32], index: 4, kind: input, shape index: {}]   ;;  %s2670_s5 = inlined_call_operand.hbm [shape: f32[16,32], index: 5, kind: output, shape index: {}]  }
   0x1   :  { %12 = vsyncpa [#allocation5 + $0x1], 0  ;;  %s2110_s18 = smov 0   ;;  %s2112_s19 = smov 0  }
   0x2   :  { %s2114_s20 = smov 0   ;;  %s2116_s21 = smov 0  }
   0x3 LB: > { %s2131_s22 = sadd.s32 4294967295, %s2075_s21   ;;  %s1697_s23 = sadd.s32 4294967294, %s2075_s21   ;;  %s2075_s21 = sphi %s2116_s21, %s2676_s21   ;;  %s2071_s20 = sphi %s2114_s20, %s2675_s20   ;;  %s2067_s19 = sphi %s2112_s19, %s2674_s19   ;;  %s2063_s18 = sphi %s2110_s18, %s2673_s18  }
   0x4   : > { %s2135_s24 = sadd.s32 1, %s2075_s21   ;;  %s135_s25 = sadd.s32 1, %s2071_s20 }
   0x5   : > { %s132_s26 = ssub.s32 %s2075_s21, %s2135_s24  ;;  %p145_p0 = scmp.ne.s32.totalorder %s2071_s20, %s2067_s19 }
   0x6   : > { %p133_p1 = scmp.eq.s32.totalorder %s132_s26, 0  ;;  %p146_p2 = scmp.eq.s32.totalorder %s2131_s22, 1 }
   0x7   : > { %p151_p3 = scmp.ne.s32.totalorder %s2067_s19, %s2063_s18  ;;  %p152_p4 = scmp.eq.s32.totalorder %s1697_s23, 1 }
   0x8   : > { %s2146_s27 = scalar_select %p133_p1, %s2071_s20, %s135_s25  }
   0x9   : > { %p2148_p5 = por %p146_p2, %p145_p0  ;;  %p2152_p6 = por %p152_p4, %p151_p3 }
   0xa   : > { %p1700_p7 = scmp.ge.s32.totalorder %s2075_s21, 1  ;;  %p189_p8 = scmp.lt.s32.totalorder %s2075_s21, 3 }
   0xc   : > { %p190_p9 = pnand %p1700_p7, %p189_p8 }
   0xd   : > { %v222_v0 = vld [vmem:[%s2666_s1 + $0x8] sm:$0xff] (!%p190_p9)  ;;  %v221_v2 = vld [vmem:[%s2666_s1] sm:$0xff] (!%p190_p9)  ;;  %p216_p10 = scmp.lt.s32.totalorder (!%p190_p9), %s2131_s22, 1  ;;  %v2077_v7 = vmov (!%p190_p9), 0.0   ;;  %v224_v12 = vld [vmem:[%s2666_s1 + $0x18] sm:$0xff] (!%p190_p9)  ;;  %vm333_vm0 = vcmask (!%p190_p9), 261120  }
   0xe   : > { %193 = sbr.rel (%p190_p9) target bundleno = 1233 (0x4d1), region = 40  ;;  %v234_v1 = vld [vmem:[%s2666_s1 + $0x68] sm:$0xff] (!%p190_p9)  ;;  %v233_v4 = vld [vmem:[%s2666_s1 + $0x60] sm:$0xff] (!%p190_p9)  ;;  %401 = vmatprep.mubr.f32.mxu0 (!%p190_p9), %v2077_v7  ;;  %472 = vmatprep.mubr.f32.mxu1 (!%p190_p9), %v2077_v7  ;;  %v236_v13 = vld [vmem:[%s2666_s1 + $0x78] sm:$0xff] (!%p190_p9)  ;;  %vm2078_vm1 = vmmov (!%p190_p9), 0   ;;  %vm848_vm2 = vcmask (!%p190_p9), 64512  }
   0xf   : > { %v1844_v3 = vpack.c.bf16 (!%p190_p9), %v234_v1, %v222_v0  ;;  %v246_v5 = vld [vmem:[%s2666_s1 + $0xc8] sm:$0xff] (!%p190_p9)  ;;  %v1846_v8 = vpack.c.bf16 (!%p190_p9), %v233_v4, %v221_v2  ;;  %v245_v10 = vld [vmem:[%s2666_s1 + $0xc0] sm:$0xff] (!%p190_p9)  ;;  %v223_v14 = vld [vmem:[%s2666_s1 + $0x10] sm:$0xff] (!%p190_p9)  ;;  %v1852_v17 = vpack.c.bf16 (!%p190_p9), %v236_v13, %v224_v12  ;;  %s213_s15 = sand.u32 (!%p190_p9), 1, %s2067_s19   ;;  %s1715_s23 = sshll.u32 (!%p190_p9), %s2131_s22, 7 }
  0x10   : > { %v258_v6 = vld [vmem:[%s2666_s1 + $0x128] sm:$0xff] (!%p190_p9)  ;;  %v257_v11 = vld [vmem:[%s2666_s1 + $0x120] sm:$0xff] (!%p190_p9)  ;;  %v235_v15 = vld [vmem:[%s2666_s1 + $0x70] sm:$0xff] (!%p190_p9)  ;;  %s1701_s16 = sshll.u32 (!%p190_p9), %s213_s15, 3 }
  0x11   : > { %v1848_v9 = vpack.c.bf16 (!%p190_p9), %v258_v6, %v246_v5  ;;  %1845 = vmatprep.subr.bf16.mxu0 (!%p190_p9), %v1844_v3  ;;  %v1850_v16 = vpack.c.bf16 (!%p190_p9), %v257_v11, %v245_v10  ;;  %v1854_v18 = vpack.c.bf16 (!%p190_p9), %v235_v15, %v223_v14  ;;  %v226_v19 = vld [vmem:[%s2666_s1 + $0x28] sm:$0xff] (!%p190_p9)  ;;  %v225_v21 = vld [vmem:[%s2666_s1 + $0x20] sm:$0xff] (!%p190_p9)  ;;  %v248_v24 = vld [vmem:[%s2666_s1 + $0xd8] sm:$0xff] (!%p190_p9)  ;;  %1853 = vmatprep.subr.bf16.mxu1 (!%p190_p9), %v1852_v17  ;;  %v273_v11 = vlaneseq (!%p190_p9)  ;;  %s215_s25 = scalar_lea.vmem (!%p190_p9), [#allocation4], %s1701_s16 }
  0x12   : > { %1847 = vmatpush1.bf16.msra.mxu0 (!%p190_p9), %v1846_v8  ;;  %v238_v20 = vld [vmem:[%s2666_s1 + $0x88] sm:$0xff] (!%p190_p9)  ;;  %v237_v23 = vld [vmem:[%s2666_s1 + $0x80] sm:$0xff] (!%p190_p9)  ;;  %v260_v25 = vld [vmem:[%s2666_s1 + $0x138] sm:$0xff] (!%p190_p9)  ;;  %s1638_s26 = sshll.u32 (!%p190_p9), %s215_s25, 4  ;;  %s2624_s26 = int_to_ptr.vmem [resolvable:$true] %s1638_s26 }
  0x13   : > { %1849 = vmatprep.subr.bf16.mxu0 (!%p190_p9), %v1848_v9  ;;  %v1860_v22 = vpack.c.bf16 (!%p190_p9), %v238_v20, %v226_v19  ;;  %v1856_v27 = vpack.c.bf16 (!%p190_p9), %v260_v25, %v248_v24  ;;  %v247_v28 = vld [vmem:[%s2666_s1 + $0xd0] sm:$0xff] (!%p190_p9)  ;;  %1855 = vmatpush1.bf16.msra.mxu1 (!%p190_p9), %v1854_v18  ;;  %v250_v31 = vld [vmem:[%s2666_s1 + $0xe8] sm:$0xff] (!%p190_p9)  ;;  %v249_v33 = vld [vmem:[%s2666_s1 + $0xe0] sm:$0xff] (!%p190_p9)  ;;  %v1862_v34 = vpack.c.bf16 (!%p190_p9), %v237_v23, %v225_v21  ;;  %v2333_v12 = vshrl.u32 (!%p190_p9), %v273_v11, 7  ;;  %s2013_s9 = scalar_lea.vmem (!%p190_p9), %s2624_s26, 128 }
  0x14   : > { %v259_v29 = vld [vmem:[%s2666_s1 + $0x130] sm:$0xff] (!%p190_p9)  ;;  %v262_v32 = vld [vmem:[%s2666_s1 + $0x148] sm:$0xff] (!%p190_p9)  ;;  %v261_v35 = vld [vmem:[%s2666_s1 + $0x140] sm:$0xff] (!%p190_p9)  ;;  %p2014_p11 = scmp.ne.s32.totalorder (!%p190_p9), %s2624_s26, %s2013_s9 }
  0x15   : > { %s217_s7 = scalar_select %p216_p10, %s2131_s22, 1  ;;  %v1858_v30 = vpack.c.bf16 %v259_v29, %v247_v28  ;;  %1857 = vmatprep.subr.bf16.mxu1 %v1856_v27  ;;  %v228_v36 = vld [vmem:[%s2666_s1 + $0x38] sm:$0xff]  ;;  %v1864_v38 = vpack.c.bf16 %v262_v32, %v250_v31  ;;  %v227_v40 = vld [vmem:[%s2666_s1 + $0x30] sm:$0xff]  ;;  %v230_v45 = vld [vmem:[%s2666_s1 + $0x48] sm:$0xff]  ;;  %v1866_v47 = vpack.c.bf16 %v261_v35, %v249_v33  ;;  %v291_v15 = vsub.s32 4, %v2333_v12 }
  0x16   : > { %1851 = vmatpush1.bf16.msra.mxu0 %v1850_v16  ;;  %v240_v37 = vld [vmem:[%s2666_s1 + $0x98] sm:$0xff]  ;;  %v239_v41 = vld [vmem:[%s2666_s1 + $0x90] sm:$0xff]  ;;  %v242_v46 = vld [vmem:[%s2666_s1 + $0xa8] sm:$0xff]  ;;  %v275_v18 = vsub.s32 0, %v2333_v12  ;;  %v295_v21 = vsub.s32 5, %v2333_v12  ;;  %v279_v24 = vsub.s32 1, %v2333_v12  ;;  %p2015_p12 = pnand %p2014_p11, %p2148_p5 }
  0x17   : > { %s1702_s14 = sshll.u32 %s217_s7, 3  ;;  %1861 = vmatprep.subr.bf16.mxu0 %v1860_v22  ;;  %v1868_v39 = vpack.c.bf16 %v240_v37, %v228_v36  ;;  %v252_v42 = vld [vmem:[%s2666_s1 + $0xf8] sm:$0xff]  ;;  %1859 = vmatpush1.bf16.msra.mxu1 %v1858_v30  ;;  %v1870_v44 = vpack.c.bf16 %v239_v41, %v227_v40  ;;  %v251_v49 = vld [vmem:[%s2666_s1 + $0xf0] sm:$0xff]  ;;  %v1876_v51 = vpack.c.bf16 %v242_v46, %v230_v45  ;;  %v229_v52 = vld [vmem:[%s2666_s1 + $0x40] sm:$0xff]  ;;  %v299_v22 = vsub.s32 6, %v2333_v12  ;;  %s1625_s7 = scalar_lea.sflag [#allocation5], %s213_s15 }
  0x18   : > { %s219_s8 = scalar_lea.vmem %s2665_s0, %s1702_s14  ;;  %v264_v43 = vld [vmem:[%s2666_s1 + $0x158] sm:$0xff]  ;;  %v263_v50 = vld [vmem:[%s2666_s1 + $0x150] sm:$0xff]  ;;  %v241_v53 = vld [vmem:[%s2666_s1 + $0xa0] sm:$0xff]  ;;  %v283_v33 = vsub.s32 2, %v2333_v12  ;;  %v303_v36 = vsub.s32 7, %v2333_v12  ;;  %v287_v40 = vsub.s32 3, %v2333_v12  ;;  %p2016_p13 = pneg %p2015_p12 }
  0x19   : > { %v2219_v26 = vld [vmem:[%s219_s8] sm:$0xff]  ;;  %v1872_v48 = vpack.c.bf16 %v264_v43, %v252_v42  ;;  %1869 = vmatprep.subr.bf16.mxu1 %v1868_v39  ;;  %v1874_v54 = vpack.c.bf16 %v263_v50, %v251_v49  ;;  %v1878_v55 = vpack.c.bf16 %v241_v53, %v229_v52  ;;  %v254_v56 = vld [vmem:[%s2666_s1 + $0x108] sm:$0xff]  ;;  %v232_v62 = vld [vmem:[%s2666_s1 + $0x58] sm:$0xff]  ;;  %s2622_s8 = scalar_lea.hbm %s2670_s5, %s1715_s23  ;;  %s2079_s22 = smov [#allocation4]  }
  0x1a   : > { %1703 = vmatmul.mubr.msk.f32.vlgmr.msra.gmra.mrb[0].mxu0 %vm333_vm0, %v2219_v26  ;;  %1704 = vmatmul.mubr.msk.f32.vlgmr.msra.gmra.mrb[0].mxu1 %vm333_vm0, %v2219_v26  ;;  %v266_v57 = vld [vmem:[%s2666_s1 + $0x168] sm:$0xff]  ;;  %v253_v59 = vld [vmem:[%s2666_s1 + $0x100] sm:$0xff]  ;;  %v244_v63 = vld [vmem:[%s2666_s1 + $0xb8] sm:$0xff]  ;;  %s2017_s10 = sshll.u32 %s2079_s22, 4  ;;  %s2018_s10 = int_to_ptr.vmem [resolvable:$false] %s2017_s10 }
  0x1b   : > { %1863 = vmatpush1.bf16.msra.mxu0 %v1862_v34  ;;  %543 = vmatprep.mubr.f32.mxu0 %v2077_v7  ;;  %v1880_v58 = vpack.c.bf16 %v266_v57, %v254_v56  ;;  %v265_v60 = vld [vmem:[%s2666_s1 + $0x160] sm:$0xff]  ;;  %v231_v0 = vld [vmem:[%s2666_s1 + $0x50] sm:$0xff]  ;;  %v1884_v1 = vpack.c.bf16 %v244_v63, %v232_v62  ;;  %v256_v3 = vld [vmem:[%s2666_s1 + $0x118] sm:$0xff]  ;;  %s2019_s11 = scalar_lea.vmem %s2018_s10, 256  ;;  %p2020_p0 = scmp.lt.s32.totalorder %s2624_s26, %s2018_s10 }
  0x1c   : > { %1865 = vmatprep.subr.bf16.mxu0 %v1864_v38  ;;  %1871 = vmatpush1.bf16.msra.mxu1 %v1870_v44  ;;  %v1882_v61 = vpack.c.bf16 %v265_v60, %v253_v59  ;;  %v243_v2 = vld [vmem:[%s2666_s1 + $0xb0] sm:$0xff]  ;;  %v268_v4 = vld [vmem:[%s2666_s1 + $0x178] sm:$0xff]  ;;  %v269_v17 = vld [vmem:[%s2667_s2] sm:$0xff]  ;;  %p2021_p1 = scmp.lt.s32.totalorder %s2019_s11, %s2013_s9 }
  0x1d   : > { %614 = vmatprep.mubr.f32.mxu1 %v2077_v7  ;;  %1873 = vmatprep.subr.bf16.mxu1 %v1872_v48  ;;  %v1886_v5 = vpack.c.bf16 %v243_v2, %v231_v0  ;;  %v1888_v6 = vpack.c.bf16 %v268_v4, %v256_v3  ;;  %v255_v8 = vld [vmem:[%s2666_s1 + $0x110] sm:$0xff]  ;;  %v292_v20 = vrot.slane %v269_v17, %v291_v15  ;;  %v2364_v46 = vld [vmem:[%s2667_s2 + $0x8] sm:$0xf] }
  0x1e   : > { %v267_v9 = vld [vmem:[%s2666_s1 + $0x170] sm:$0xff]  ;;  %v276_v23 = vrot.slane %v269_v17, %v275_v18  ;;  %v296_v27 = vrot.slane %v269_v17, %v295_v21  ;;  %v300_v29 = vrot.slane %v269_v17, %v299_v22  ;;  %v280_v32 = vrot.slane %v269_v17, %v279_v24  ;;  %p2022_p2 = por %p2021_p1, %p2020_p0 }
  0x1f   : > { %1867 = vmatpush1.bf16.msra.mxu0 %v1866_v47  ;;  %v1890_v10 = vpack.c.bf16 %v267_v9, %v255_v8  ;;  %v284_v39 = vrot.slane %v269_v17, %v283_v33  ;;  %v304_v41 = vrot.slane %v269_v17, %v303_v36  ;;  %v288_v43 = vrot.slane %v269_v17, %v287_v40  ;;  %v1432_v36 = vld [vmem:[%s2668_s3 + $0xa0] sm:$0xff] }
  0x20   : > { %1877 = vmatprep.subr.bf16.mxu0 %v1876_v51  ;;  %1875 = vmatpush1.bf16.msra.mxu1 %v1874_v54  ;;  %v308_v47 = vrot.slane %v2364_v46, %v275_v18  ;;  %p2023_p3 = pnand %p2022_p2, %p2016_p13 }
  0x21   : > { %1885 = vmatprep.subr.bf16.mxu1 %v1884_v1 }
  0x22   : > { %1705 = vmatmul.mubr.msk.f32.vlgmr.msra.gmra.mrb[2].mxu0 %vm333_vm0, %v2219_v26 }
  0x23   : > { %1879 = vmatpush1.bf16.msra.mxu0 %v1878_v55  ;;  %685 = vmatprep.mubr.f32.mxu0 %v2077_v7 }
  0x24   : > { %1706 = vmatmul.mubr.msk.f32.vlgmr.msra.gmra.mrb[2].mxu1 %vm333_vm0, %v2219_v26  ;;  %1881 = vmatprep.subr.bf16.mxu0 %v1880_v58 }
  0x25   : > { %756 = vmatprep.mubr.f32.mxu1 %v2077_v7  ;;  %1887 = vmatpush1.bf16.msra.mxu1 %v1886_v5 }
  0x26   : > { %1889 = vmatprep.subr.bf16.mxu1 %v1888_v6 }
  0x27   : > { %1883 = vmatpush1.bf16.msra.mxu0 %v1882_v61 }
  0x28   : > { %1804 = vmatprep.subr.mxu0 %v2077_v7 }
  0x29   : > { %1891 = vmatpush1.bf16.msra.mxu1 %v1890_v10 }
  0x2a   : > { %1707 = vmatmul.mubr.msk.f32.vlgmr.msra.gmra.mrb[4].mxu0 %vm333_vm0, %v2219_v26  ;;  %1809 = vmatprep.subr.mxu1 %v2077_v7 }
  0x2b   : > { %1806 = vmatprep.mubr.msk.f32.mxu0 %vm2078_vm1, %v2077_v7 }
  0x2c   : > { %1708 = vmatmul.mubr.msk.f32.vlgmr.msra.gmra.mrb[4].mxu1 %vm333_vm0, %v2219_v26 }
  0x2d   : > { %1811 = vmatprep.mubr.msk.f32.mxu1 %vm2078_vm1, %v2077_v7 }
  0xed   : > { %v403_v13 = vpop.f32.mrb[0].mxu0  ;;  %v474_v16 = vpop.f32.mrb[0].mxu1 }
  0xee   : > { %v405_v14 = vpop.f32.mrb[1].mxu0  ;;  %v476_v19 = vpop.f32.mrb[1].mxu1  ;;  %v404_v31 = vadd.f32 %v403_v13, %v276_v23  ;;  %v475_v42 = vadd.f32 %v474_v16, %v284_v39  ;;  %v1428_v23 = vld [vmem:[%s2668_s3 + $0x80] sm:$0xff] }
  0xef   : > { %v406_v38 = vadd.f32 %v405_v14, %v280_v32  ;;  %v477_v45 = vadd.f32 %v476_v19, %v288_v43  ;;  %v1434_v43 = vld [vmem:[%s2668_s3 + $0xb0] sm:$0xff] }
  0xf5   : > { %v545_v25 = vpop.f32.mrb[2].mxu0 }
  0xf6   : > { %v546_v26 = vadd.f32 %v545_v25, %v292_v20  ;;  %v547_v28 = vpop.f32.mrb[3].mxu0  ;;  %v1429_v25 = vld [vmem:[%s2668_s3 + $0x88] sm:$0xff] }
  0xf7   : > { %v616_v30 = vpop.f32.mrb[2].mxu1  ;;  %v548_v35 = vadd.f32 %v547_v28, %v296_v27  ;;  %v1892_v27 = vpack.c.bf16 %v1429_v25, %v1428_v23  ;;  %v1413_v28 = vld [vmem:[%s2668_s3 + $0x8] sm:$0xff] }
  0xf8   : > { %1805 = vmatpush3.xpose.msra.mxu0 %v546_v26  ;;  %v618_v34 = vpop.f32.mrb[3].mxu1  ;;  %v617_v37 = vadd.f32 %v616_v30, %v300_v29  ;;  %v1412_v26 = vld [vmem:[%s2668_s3] sm:$0xff]  ;;  %v1430_v29 = vld [vmem:[%s2668_s3 + $0x90] sm:$0xff]  ;;  %v1431_v30 = vld [vmem:[%s2668_s3 + $0x98] sm:$0xff] }
  0xf9   : > { %1814 = vmatprep.subr.mxu0 %v2077_v7  ;;  %v619_v44 = vadd.f32 %v618_v34, %v304_v41  ;;  %v1896_v32 = vpack.c.bf16 %v1431_v30, %v1430_v29  ;;  %v1414_v34 = vld [vmem:[%s2668_s3 + $0x10] sm:$0xff]  ;;  %v1416_v41 = vld [vmem:[%s2668_s3 + $0x20] sm:$0xff] }
  0xfb   : > { %1807 = vmatmul.mubr.f32.vlgmr.msra.gmra.mrb[6].mxu0 %v404_v31  ;;  %v1894_v31 = vpack.c.bf16 %v1413_v28, %v1412_v26  ;;  %v1445_v26 = vld [vmem:[%s2668_s3 + $0x108] sm:$0xff] }
  0xfc   : > { %1815 = vmatpush3.xpose.msra.mxu0 %v548_v35  ;;  %1816 = vmatprep.mubr.msk.f32.mxu0 %vm2078_vm1, %v2077_v7  ;;  %v1415_v35 = vld [vmem:[%s2668_s3 + $0x18] sm:$0xff] }
  0xfd   : > { %1824 = vmatprep.subr.mxu0 %v2077_v7  ;;  %v687_v48 = vpop.f32.mrb[4].mxu0 }
  0xfe   : > { %v688_v49 = vadd.f32 %v687_v48, %v308_v47  ;;  %v2367_v50 = vpop.f32.mrb[5].mxu0  ;;  %v1418_v48 = vld [vmem:[%s2668_s3 + $0x30] sm:$0xff] }
  0xff   : > { %1817 = vmatmul.mubr.f32.vlgmr.msra.gmra.mrb[8].mxu0 %v406_v38  ;;  %v2390_v21 = vpop.f32.mrb[4].mxu1  ;;  %v1898_v38 = vpack.c.bf16 %v1415_v35, %v1414_v34  ;;  %v1464_v34 = vld [vmem:[%s2668_s3 + $0x1a0] sm:$0xff] }
 0x100   : > { %1825 = vmatpush3.xpose.msra.mxu0 %v617_v37  ;;  %1826 = vmatprep.mubr.msk.f32.mxu0 %vm2078_vm1, %v2077_v7  ;;  %v2392_v22 = vpop.f32.mrb[5].mxu1  ;;  %v1433_v37 = vld [vmem:[%s2668_s3 + $0xa8] sm:$0xff] }
 0x101   : > { %1834 = vmatprep.subr.mxu0 %v2077_v7  ;;  %1810 = vmatpush3.msra.mxu1 %v688_v49  ;;  %v1900_v39 = vpack.c.bf16 %v1433_v37, %v1432_v36  ;;  %v1419_v49 = vld [vmem:[%s2668_s3 + $0x38] sm:$0xff]  ;;  %v1448_v36 = vld [vmem:[%s2668_s3 + $0x120] sm:$0xff]  ;;  %v1449_v37 = vld [vmem:[%s2668_s3 + $0x128] sm:$0xff] }
 0x102   : > { %1819 = vmatprep.subr.mxu1 %v2077_v7 }
 0x103   : > { %1827 = vmatmul.mubr.f32.vlgmr.msra.gmra.mrb[10].mxu0 %v475_v42  ;;  %v1417_v42 = vld [vmem:[%s2668_s3 + $0x28] sm:$0xff] }
 0x104   : > { %1835 = vmatpush3.xpose.msra.mxu0 %v619_v44  ;;  %1836 = vmatprep.mubr.msk.f32.mxu0 %vm2078_vm1, %v2077_v7  ;;  %v1435_v44 = vld [vmem:[%s2668_s3 + $0xb8] sm:$0xff] }
 0x105   : > { %1893 = vmatprep.subr.bf16.mxu0 %v1892_v27  ;;  %v1904_v47 = vpack.c.bf16 %v1435_v44, %v1434_v43  ;;  %v1463_v27 = vld [vmem:[%s2668_s3 + $0x198] sm:$0xff]  ;;  %v1450_v43 = vld [vmem:[%s2668_s3 + $0x130] sm:$0xff] }
 0x106   : > { %v1451_v44 = vld [vmem:[%s2668_s3 + $0x138] sm:$0xff] }
 0x107   : > { %1837 = vmatmul.mubr.f32.vlgmr.msra.gmra.mrb[12].mxu0 %v477_v45  ;;  %v1902_v45 = vpack.c.bf16 %v1417_v42, %v1416_v41  ;;  %v1934_v41 = vpack.c.bf16 %v1449_v37, %v1448_v36 }
 0x108   : > { %1895 = vmatpush3.bf16.msra.mxu0 %v1894_v31  ;;  %v1446_v31 = vld [vmem:[%s2668_s3 + $0x110] sm:$0xff] }
 0x109   : > { %1897 = vmatprep.subr.bf16.mxu0 %v1896_v32  ;;  %v1447_v32 = vld [vmem:[%s2668_s3 + $0x118] sm:$0xff] }
 0x10c   : > { %1899 = vmatpush3.bf16.msra.mxu0 %v1898_v38  ;;  %v1466_v38 = vld [vmem:[%s2668_s3 + $0x1b0] sm:$0xff] }
 0x10d   : > { %1901 = vmatprep.subr.bf16.mxu0 %v1900_v39  ;;  %v1467_v39 = vld [vmem:[%s2668_s3 + $0x1b8] sm:$0xff] }
 0x10e   : > { %v1936_v42 = vpack.c.bf16 %v1467_v39, %v1466_v38 }
 0x110   : > { %1903 = vmatpush3.bf16.msra.mxu0 %v1902_v45  ;;  %v1468_v45 = vld [vmem:[%s2668_s3 + $0x1c0] sm:$0xff] }
 0x111   : > { %1905 = vmatprep.subr.bf16.mxu0 %v1904_v47  ;;  %v1469_v47 = vld [vmem:[%s2668_s3 + $0x1c8] sm:$0xff] }
 0x1ce   : > { %v844_v51 = vpop.f32.mrb[6].mxu0 }
 0x1cf   : > { %v1808_v52 = vpop.f32.mrb[7].mxu0  ;;  %v849_v53 = vsel %vm848_vm2, %v844_v51, -inf }
 0x1d0   : > { %850 = vmax.xlane.f32.xlu0 %v849_v53  ;;  %v1437_v52 = vld [vmem:[%s2668_s3 + $0xc8] sm:$0xff]  ;;  %v1906_v53 = vpack.c.bf16 %v1419_v49, %v1418_v48  ;;  %v1938_v48 = vpack.c.bf16 %v1451_v44, %v1450_v43  ;;  %v1940_v49 = vpack.c.bf16 %v1469_v47, %v1468_v45 }
 0x1d2   : > { %v1003_v54 = vpop.f32.mrb[8].mxu0  ;;  %1907 = vmatpush3.bf16.msra.mxu0 %v1906_v53 }
 0x1d3   : > { %v1818_v55 = vpop.f32.mrb[9].mxu0  ;;  %v1007_v56 = vsel %vm848_vm2, %v1003_v54, -inf }
 0x1d4   : > { %1008 = vmax.xlane.f32.xlu0 %v1007_v56  ;;  %v1420_v55 = vld [vmem:[%s2668_s3 + $0x40] sm:$0xff]  ;;  %v1421_v56 = vld [vmem:[%s2668_s3 + $0x48] sm:$0xff] }
 0x1d6   : > { %v1161_v57 = vpop.f32.mrb[10].mxu0 }
 0x1d7   : > { %v1828_v58 = vpop.f32.mrb[11].mxu0  ;;  %v1165_v59 = vsel %vm848_vm2, %v1161_v57, -inf }
 0x1d8   : > { %1166 = vmax.xlane.f32.xlu1 %v1165_v59  ;;  %v1439_v58 = vld [vmem:[%s2668_s3 + $0xd8] sm:$0xff]  ;;  %v1910_v59 = vpack.c.bf16 %v1421_v56, %v1420_v55  ;;  %v1470_v56 = vld [vmem:[%s2668_s3 + $0x1d0] sm:$0xff] }
 0x1d9   : > { %v1443_v55 = vld [vmem:[%s2668_s3 + $0xf8] sm:$0xff] }
 0x1da   : > { %v1319_v60 = vpop.f32.mrb[12].mxu0 }
 0x1db   : > { %v1838_v61 = vpop.f32.mrb[13].mxu0  ;;  %v1323_v62 = vsel %vm848_vm2, %v1319_v60, -inf }
 0x1dc   : > { %1324 = vmax.xlane.f32.xlu1 %v1323_v62  ;;  %v1422_v61 = vld [vmem:[%s2668_s3 + $0x50] sm:$0xff]  ;;  %v1423_v62 = vld [vmem:[%s2668_s3 + $0x58] sm:$0xff] }
 0x25d   : > { %v851_v63 = vpop.xlane.xlu0 %850 }
 0x25e   : > { %v852_v0 = vsub.f32 %v844_v51, %v851_v63  ;;  %v1436_v51 = vld [vmem:[%s2668_s3 + $0xc0] sm:$0xff] }
 0x25f   : > { %v1440_v63 = vld [vmem:[%s2668_s3 + $0xe0] sm:$0xff] }
 0x260   : > { %v853_v1 = vmul.f32 1.442695, %v852_v0  ;;  %v1441_v0 = vld [vmem:[%s2668_s3 + $0xe8] sm:$0xff] }
 0x261   : > { %v1009_v2 = vpop.xlane.xlu0 %1008 }
 0x262   : > { %1997 = vpow2.f32 %v853_v1  ;;  %v1010_v3 = vsub.f32 %v1003_v54, %v1009_v2  ;;  %v1908_v54 = vpack.c.bf16 %v1437_v52, %v1436_v51  ;;  %v1914_v1 = vpack.c.bf16 %v1423_v62, %v1422_v61  ;;  %v1452_v51 = vld [vmem:[%s2668_s3 + $0x140] sm:$0xff]  ;;  %v1453_v52 = vld [vmem:[%s2668_s3 + $0x148] sm:$0xff] }
 0x263   : > { %v1916_v2 = vpack.c.bf16 %v1441_v0, %v1440_v63  ;;  %v1942_v53 = vpack.c.bf16 %v1453_v52, %v1452_v51  ;;  %v1454_v63 = vld [vmem:[%s2668_s3 + $0x150] sm:$0xff]  ;;  %v1455_v0 = vld [vmem:[%s2668_s3 + $0x158] sm:$0xff] }
 0x264   : > { %v1011_v4 = vmul.f32 1.442695, %v1010_v3  ;;  %1909 = vmatprep.subr.bf16.mxu0 %v1908_v54  ;;  %v1424_v3 = vld [vmem:[%s2668_s3 + $0x60] sm:$0xff]  ;;  %v1442_v54 = vld [vmem:[%s2668_s3 + $0xf0] sm:$0xff] }
 0x265   : > { %v1167_v5 = vpop.xlane.xlu1 %1166  ;;  %1911 = vmatpush3.bf16.msra.mxu0 %v1910_v59  ;;  %v1426_v59 = vld [vmem:[%s2668_s3 + $0x70] sm:$0xff] }
 0x266   : > { %1999 = vpow2.f32 %v1011_v4  ;;  %v1168_v6 = vsub.f32 %v1161_v57, %v1167_v5  ;;  %v1438_v57 = vld [vmem:[%s2668_s3 + $0xd0] sm:$0xff]  ;;  %v1425_v4 = vld [vmem:[%s2668_s3 + $0x68] sm:$0xff] }
 0x267   : > { %v1918_v5 = vpack.c.bf16 %v1425_v4, %v1424_v3  ;;  %v1473_v3 = vld [vmem:[%s2668_s3 + $0x1e8] sm:$0xff] }
 0x268   : > { %v1169_v8 = vmul.f32 1.442695, %v1168_v6 }
 0x269   : > { %v1325_v9 = vpop.xlane.xlu1 %1324 }
 0x26a   : > { %2001 = vpow2.f32 %v1169_v8  ;;  %v1326_v10 = vsub.f32 %v1319_v60, %v1325_v9  ;;  %v1912_v60 = vpack.c.bf16 %v1439_v58, %v1438_v57  ;;  %v1920_v57 = vpack.c.bf16 %v1443_v55, %v1442_v54  ;;  %v1471_v58 = vld [vmem:[%s2668_s3 + $0x1d8] sm:$0xff] }
 0x26b   : > { %v1944_v61 = vpack.c.bf16 %v1471_v58, %v1470_v56 }
 0x26c   : > { %v2374_v11 = vpop.eup %1997  ;;  %v1327_v13 = vmul.f32 1.442695, %v1326_v10  ;;  %1913 = vmatprep.subr.bf16.mxu0 %v1912_v60  ;;  %v312_v10 = vrot.slane %v2364_v46, %v279_v24  ;;  %v320_v24 = vrot.slane %v2364_v46, %v287_v40  ;;  %v1427_v60 = vld [vmem:[%s2668_s3 + $0x78] sm:$0xff] }
 0x26d   : > { %v855_v14 = vsel %vm848_vm2, %v2374_v11, 0.0  ;;  %1915 = vmatpush3.bf16.msra.mxu0 %v1914_v1  ;;  %v1922_v62 = vpack.c.bf16 %v1427_v60, %v1426_v59  ;;  %v1946_v1 = vpack.c.bf16 %v1455_v0, %v1454_v63 }
 0x26e   : > { %2003 = vpow2.f32 %v1327_v13  ;;  %856 = vadd.xlane.f32.xlu0 %v855_v14  ;;  %1917 = vmatprep.subr.bf16.mxu0 %v1916_v2  ;;  %v316_v14 = vrot.slane %v2364_v46, %v283_v33  ;;  %v761_v40 = vadd.f32 %v2392_v22, %v320_v24  ;;  %v1462_v22 = vld [vmem:[%s2668_s3 + $0x190] sm:$0xff]  ;;  %v1472_v2 = vld [vmem:[%s2668_s3 + $0x1e0] sm:$0xff] }
 0x26f   : > { %v1928_v30 = vpack.c.bf16 %v1463_v27, %v1462_v22  ;;  %v1948_v4 = vpack.c.bf16 %v1473_v3, %v1472_v2 }
 0x270   : > { %v2378_v15 = vpop.eup %1999  ;;  %v759_v25 = vadd.f32 %v2390_v21, %v316_v14  ;;  %v1444_v21 = vld [vmem:[%s2668_s3 + $0x100] sm:$0xff]  ;;  %v1458_v14 = vld [vmem:[%s2668_s3 + $0x170] sm:$0xff] }
 0x271   : > { %v1013_v16 = vsel %vm848_vm2, %v2378_v15, 0.0  ;;  %1919 = vmatpush3.bf16.msra.mxu0 %v1918_v5  ;;  %v1926_v28 = vpack.c.bf16 %v1445_v26, %v1444_v21  ;;  %v1456_v5 = vld [vmem:[%s2668_s3 + $0x160] sm:$0xff] }
 0x272   : > { %1014 = vadd.xlane.f32.xlu1 %v1013_v16  ;;  %1921 = vmatprep.subr.bf16.mxu0 %v1920_v57  ;;  %v1713_v21 = vld [vmem:[%s2669_s4] ss:$0 sm:$0xff] }
 0x274   : > { %v2382_v17 = vpop.eup %2001 }
 0x275   : > { %v1171_v18 = vsel %vm848_vm2, %v2382_v17, 0.0  ;;  %1923 = vmatpush3.bf16.msra.mxu0 %v1922_v62 }
 0x276   : > { %1172 = vadd.xlane.f32.xlu0 %v1171_v18 }
 0x278   : > { %v2386_v19 = vpop.eup %2003 }
 0x279   : > { %v1329_v20 = vsel %vm848_vm2, %v2386_v19, 0.0 }
 0x27a   : > { %1330 = vadd.xlane.f32.xlu1 %v1329_v20  ;;  %v690_v20 = vadd.f32 %v2367_v50, %v312_v10  ;;  %v1460_v50 = vld [vmem:[%s2668_s3 + $0x180] sm:$0xff]  ;;  %v1475_v10 = vld [vmem:[%s2668_s3 + $0x1f8] sm:$0xff] }
 0x2fb   : > { %v857_v6 = vpop.xlane.xlu0 %856 }
 0x2fc   : > { %2005 = vrcp.f32 %v857_v6  ;;  %v1457_v6 = vld [vmem:[%s2668_s3 + $0x168] sm:$0xff] }
 0x2ff   : > { %v1015_v8 = vpop.xlane.xlu1 %1014 }
 0x300   : > { %2007 = vrcp.f32 %v1015_v8  ;;  %v1950_v8 = vpack.c.bf16 %v1457_v6, %v1456_v5 }
 0x303   : > { %v1173_v9 = vpop.xlane.xlu0 %1172 }
 0x304   : > { %2009 = vrcp.f32 %v1173_v9  ;;  %v1474_v9 = vld [vmem:[%s2668_s3 + $0x1f0] sm:$0xff] }
 0x306   : > { %v2006_v13 = vpop.eup %2005 }
 0x307   : > { %v859_v16 = vmul.f32 %v2006_v13, %v2374_v11  ;;  %v1331_v18 = vpop.xlane.xlu1 %1330  ;;  %v1461_v11 = vld [vmem:[%s2668_s3 + $0x188] sm:$0xff]  ;;  %v1952_v13 = vpack.c.bf16 %v1475_v10, %v1474_v9 }
 0x308   : > { %2011 = vrcp.f32 %v1331_v18 }
 0x309   : > { %1812 = vmatmul.mubr.msk.f32.vlgmr.msra.gmra.mrb[6].mxu1 %vm848_vm2, %v859_v16  ;;  %v1459_v16 = vld [vmem:[%s2668_s3 + $0x178] sm:$0xff] }
 0x30a   : > { %v2008_v23 = vpop.eup %2007  ;;  %1820 = vmatpush3.msra.mxu1 %v690_v20  ;;  %1821 = vmatprep.mubr.msk.f32.mxu1 %vm2078_vm1, %v2077_v7  ;;  %v1954_v18 = vpack.c.bf16 %v1459_v16, %v1458_v14 }
 0x30b   : > { %v1017_v33 = vmul.f32 %v2008_v23, %v2378_v15  ;;  %1829 = vmatprep.subr.mxu1 %v2077_v7  ;;  %v1924_v15 = vpack.c.bf16 %v1461_v11, %v1460_v50 }
 0x30d   : > { %1822 = vmatmul.mubr.msk.f32.vlgmr.msra.gmra.mrb[8].mxu1 %vm848_vm2, %v1017_v33 }
 0x30e   : > { %v2010_v12 = vpop.eup %2009  ;;  %1830 = vmatpush3.msra.mxu1 %v759_v25  ;;  %1831 = vmatprep.mubr.msk.f32.mxu1 %vm2078_vm1, %v2077_v7 }
 0x30f   : > { %v1175_v46 = vmul.f32 %v2010_v12, %v2382_v17  ;;  %1839 = vmatprep.subr.mxu1 %v2077_v7 }
 0x311   : > { %1832 = vmatmul.mubr.msk.f32.vlgmr.msra.gmra.mrb[10].mxu1 %vm848_vm2, %v1175_v46 }
 0x312   : > { %v2012_v17 = vpop.eup %2011  ;;  %1840 = vmatpush3.msra.mxu1 %v761_v40  ;;  %1841 = vmatprep.mubr.msk.f32.mxu1 %vm2078_vm1, %v2077_v7  ;;  %v1465_v7 = vld [vmem:[%s2668_s3 + $0x1a8] sm:$0xff] }
 0x313   : > { %v1333_v29 = vmul.f32 %v2012_v17, %v2386_v19  ;;  %1925 = vmatprep.subr.bf16.mxu1 %v1924_v15  ;;  %v1930_v19 = vpack.c.bf16 %v1447_v32, %v1446_v31  ;;  %v1932_v35 = vpack.c.bf16 %v1465_v7, %v1464_v34 }
 0x315   : > { %1842 = vmatmul.mubr.msk.f32.vlgmr.msra.gmra.mrb[12].mxu1 %vm848_vm2, %v1333_v29 }
 0x316   : > { %1927 = vmatpush3.bf16.msra.mxu1 %v1926_v28 }
 0x317   : > { %1929 = vmatprep.subr.bf16.mxu1 %v1928_v30 }
 0x31a   : > { %1931 = vmatpush3.bf16.msra.mxu1 %v1930_v19 }
 0x31b   : > { %1933 = vmatprep.subr.bf16.mxu1 %v1932_v35 }
 0x31e   : > { %1935 = vmatpush3.bf16.msra.mxu1 %v1934_v41 }
 0x31f   : > { %1937 = vmatprep.subr.bf16.mxu1 %v1936_v42 }
 0x322   : > { %1939 = vmatpush3.bf16.msra.mxu1 %v1938_v48 }
 0x323   : > { %1941 = vmatprep.subr.bf16.mxu1 %v1940_v49 }
 0x326   : > { %1943 = vmatpush3.bf16.msra.mxu1 %v1942_v53 }
 0x327   : > { %1945 = vmatprep.subr.bf16.mxu1 %v1944_v61 }
 0x32a   : > { %1947 = vmatpush3.bf16.msra.mxu1 %v1946_v1 }
 0x32b   : > { %1949 = vmatprep.subr.bf16.mxu1 %v1948_v4 }
 0x32e   : > { %1951 = vmatpush3.bf16.msra.mxu1 %v1950_v8 }
 0x32f   : > { %1953 = vmatprep.subr.bf16.mxu1 %v1952_v13 }
 0x332   : > { %1955 = vmatpush3.bf16.msra.mxu1 %v1954_v18 }
 0x3dc   : > { %v929_v20 = vpop.f32.mrb[6].mxu1 }
 0x3dd   : > { %v1813_v23 = vpop.f32.mrb[7].mxu1 }
 0x3e0   : > { %v1087_v25 = vpop.f32.mrb[8].mxu1 }
 0x3e1   : > { %v1823_v24 = vpop.f32.mrb[9].mxu1  ;;  %1547 = vmatprep.mubr.f32.mxu0 %v1087_v25 }
 0x3e2   : > { %1548 = vmatmul.mubr.f32.vlgmr.msra.gmra.mrb[14].mxu0 %v929_v20 }
 0x3e4   : > { %v1245_v33 = vpop.f32.mrb[10].mxu1 }
 0x3e5   : > { %v1833_v50 = vpop.f32.mrb[11].mxu1 }
 0x3e8   : > { %v1403_v11 = vpop.f32.mrb[12].mxu1 }
 0x3e9   : > { %v1843_v12 = vpop.f32.mrb[13].mxu1  ;;  %1617 = vmatprep.mubr.f32.mxu1 %v1403_v11 }
 0x3ea   : > { %1618 = vmatmul.mubr.f32.vlgmr.msra.gmra.mrb[14].mxu1 %v1245_v33 }
 0x4b5   : > { %v1766_v40 = vpop.f32.mrb[14].mxu0 }
 0x4b6   : > { %v1767_v46 = vpop.f32.mrb[15].mxu0 }
 0x4b7   : > { %v1768_v15 = vadd.f32 %v1767_v46, %v1766_v40 }
 0x4b9   : > { %v1550_v27 = vadd.f32 %v1768_v15, %v1713_v21 }
 0x4bd   : > { %v1801_v26 = vpop.f32.mrb[14].mxu1 }
 0x4be   : > { %v1802_v22 = vpop.f32.mrb[15].mxu1 }
 0x4bf   : > { %v1803_v17 = vadd.f32 %v1802_v22, %v1801_v26 }
 0x4c1   : > { %v1620_v28 = vadd.f32 %v1803_v17, %v1550_v27 }
 0x4c3   : > { %1623 = vst.msk [vmem:[%s215_s25] sm:$0xff] %vm333_vm0, %v1620_v28 }
 0x4c4   : > { %2026 = shalt.err (!%p2023_p3)
}
 0x4c5   : > { %s2027_s12 = scalar_lea.hbm %s2622_s8, 128  ;;  %s2031_s16 = scalar_lea.hbm %s2670_s5, 256 }
 0x4c6   : > { %p2028_p4 = scmp.ne.s32.totalorder %s2622_s8, %s2027_s12  ;;  %p2032_p9 = scmp.lt.u32.totalorder %s2622_s8, %s2670_s5 }
 0x4c7   : > { %p2033_p10 = scmp.lt.u32.totalorder %s2031_s16, %s2027_s12  ;;  %p2035_p12 = scmp.lt.u32.totalorder %s2027_s12, %s2622_s8 }
 0x4c8   : > { %p2029_p7 = pnand %p2028_p4, %p2148_p5 }
 0x4c9   : > { %p2034_p11 = por %p2033_p10, %p2032_p9 }
 0x4ca   : > { %p2030_p8 = pneg %p2029_p7 }
 0x4cb   : > { %p2036_p13 = por %p2035_p12, %p2034_p11 }
 0x4cd   : > { %p2037_p0 = pnand %p2036_p13, %p2030_p8 }
 0x4cf   : > { %2040 = shalt.err (!%p2037_p0)
}
 0x4d0   : > { %1956 = dma.vmem_to_hbm [thread:$0]  (%p2148_p5), %s2624_s26, 128, %s2622_s8, %s1625_s7  }
 0x4d1 PF: > { %p1962_p1 = scmp.ge.s32.totalorder %s2075_s21, 2  ;;  %s1650_s23 = sand.u32 1, %s2063_s18  }
 0x4d2   : > { %s1651_s25 = scalar_lea.sflag [#allocation5], %s1650_s23 }
 0x4d3   : > { %p1959_p2 = pnand %p1962_p1, %p2152_p6 }
 0x4d5   : > { %2058 = dma.done.wait (!%p1959_p2), %s1651_s25, 128  }
 0x4d6   : > { %2060 = vsyncadd (!%p1959_p2), %s1651_s25, 4294967168  ;;  %p15_p3 = scmp.ge.s32.totalorder %s2135_s24, 4   ;;  %s2673_s18 = smov %s2067_s19 }
 0x4d7   : > { %s2674_s19 = smov %s2071_s20  ;;  %s2675_s20 = smov %s2146_s27 }
 0x4d8   : > { %s2676_s21 = smov %s2135_s24  ;;  %17 = sbr.rel (!%p15_p3) target bundleno = 3 (0x3), region = 75 }
 0x4df   :  { %1656 = vsyncpa [#allocation5], 1 }
 0x4e0   :  { %1658 = vsyncpa [#allocation5 + $0x1], 1 }

</bundles_post_ra>
